<compile_context>
chip_gen: v7x
topology: tpu7x:2x2x1
jax: 0.10.0
libtpu: 0.0.40
codegen_flags: <defaults>
</compile_context>

<pallas_src>
import jax
import jax.numpy as jnp
from jax.experimental import pallas as pl
from jax.experimental.pallas import tpu as pltpu

LEAKY_SLOPE = 0.01   # F.leaky_relu default negative_slope
TILE_B = 256         # fills the 256-wide MXU M-dim on v6e/v7x; fine on v5e
LANE = 128
SUBLANE = 8


def _round_up(x, m):
    return ((x + m - 1) // m) * m


def _pad2d(w, rows, cols):
    if w.shape == (rows, cols):
        return w
    return jnp.zeros((rows, cols), w.dtype).at[: w.shape[0], : w.shape[1]].set(w)


def _build_kernel(bias_slices, n_layers):
    """Kernel factory; bias_slices[i] = (static offset, static width) into the bias table."""

    def kernel(x_ref, b_ref, *refs):
        out_ref = refs[-1]
        w_refs = refs[:-1]

        h = x_ref[...].astype(jnp.float32)          # activations stay f32
        for i in range(n_layers):
            w = w_refs[i][...]                      # (in_i, out_i), stored dtype
            off, width = bias_slices[i]
            b = b_ref[:, off:off + width].astype(jnp.float32)   # (1, out_i), static slice
            acc = jnp.dot(h.astype(w.dtype), w,
                          preferred_element_type=jnp.float32) + b
            if i < n_layers - 1:
                # leaky_relu as mul+max (cheaper than compare+select)
                acc = jnp.maximum(acc, LEAKY_SLOPE * acc)
            h = acc
        out_ref[...] = h.astype(out_ref.dtype)

    return kernel


def _choose_tile_b(batch, requested):
    """Pick a batch tile: cap at the (8-aligned) batch, keep >=2 grid steps when possible."""
    tb = min(requested, _round_up(batch, SUBLANE))
    tb = max(tb, SUBLANE)
    # Megacore (v7x): the parallel batch axis needs >= 2 steps to use both cores.
    while tb >= 2 * SUBLANE and _round_up(batch, tb) // tb < 2 and tb > SUBLANE:
        tb //= 2
    return _round_up(tb, SUBLANE)


def thermonet_linear_forward(x, weights, biases, *, tile_b=TILE_B):
    """x: (batch, 1, in_channels) or (batch, in_channels). Returns (batch, out_channels)."""
    # Glue: emulate PyTorch x.squeeze() for the expected (batch, 1, C) layout.
    if x.ndim == 3:
        x2d = jnp.squeeze(x, axis=1)
    elif x.ndim == 2:
        x2d = x
    else:
        raise ValueError(f"expected 2D or 3D input, got shape {x.shape}")

    batch, in_ch = x2d.shape
    n_layers = len(weights)
    assert n_layers == len(biases)
    out_dim = weights[-1].shape[1]

    # --- lane-pad every layer width to a multiple of 128 ----------------------
    dims_true = [in_ch] + [w.shape[1] for w in weights]
    dims_pad = [_round_up(d, LANE) for d in dims_true]
    in_pad, out_pad = dims_pad[0], dims_pad[-1]

    ws_padded = [_pad2d(weights[i], dims_pad[i], dims_pad[i + 1]) for i in range(n_layers)]

    # --- consolidate all biases into one lane-aligned (1, sum_N) table --------
    bias_parts, bias_slices, off = [], [], 0
    for i in range(n_layers):
        width = dims_pad[i + 1]
        bp = jnp.zeros((width,), jnp.float32).at[: biases[i].shape[0]].set(
            biases[i].astype(jnp.float32))
        bias_parts.append(bp)
        bias_slices.append((off, width))
        off += width
    bias_concat = jnp.concatenate(bias_parts).reshape(1, -1)

    # --- choose batch tile & pad the batch ------------------------------------
    tile_b = _choose_tile_b(batch, tile_b)
    padded_batch = _round_up(batch, tile_b)
    x2d_p = jnp.zeros((padded_batch, in_pad), x2d.dtype).at[:batch, :in_ch].set(x2d)

    grid = (padded_batch // tile_b,)

    # --- operands + BlockSpecs -------------------------------------------------
    operands = [x2d_p, bias_concat] + ws_padded
    in_specs = [
        pl.BlockSpec((tile_b, in_pad), lambda i: (i, 0)),          # streamed / pipelined
        pl.BlockSpec(memory_space=pltpu.MemorySpace.VMEM),         # bias table: resident, 1 buffer
    ] + [
        pl.BlockSpec(memory_space=pltpu.MemorySpace.VMEM)          # weights: resident, 1 buffer
        for _ in ws_padded
    ]
    out_spec = pl.BlockSpec((tile_b, out_pad), lambda i: (i, 0))

    # --- explicit VMEM budget ---------------------------------------------------
    weight_bytes = sum(int(w.size) * w.dtype.itemsize for w in ws_padded)
    bias_bytes = SUBLANE * int(bias_concat.shape[1]) * bias_concat.dtype.itemsize
    io_bytes = 2 * tile_b * (in_pad + out_pad) * x2d_p.dtype.itemsize   # double-buffered x/out
    top2 = sorted(dims_pad, reverse=True)[:2]
    act_bytes = tile_b * sum(top2) * 4                                  # f32 activation temps
    vmem_limit = int(1.25 * (weight_bytes + bias_bytes + io_bytes + act_bytes))
    vmem_limit = min(max(vmem_limit, 16 * 1024 * 1024), 64 * 1024 * 1024)

    # --- advisory cost estimate -------------------------------------------------
    flops = 2 * padded_batch * sum(dims_pad[i] * dims_pad[i + 1] for i in range(n_layers))
    bytes_accessed = (weight_bytes
                      + int(bias_concat.size) * bias_concat.dtype.itemsize
                      + int(x2d_p.size) * x2d_p.dtype.itemsize
                      + padded_batch * out_pad * x2d_p.dtype.itemsize)
    cost = pl.CostEstimate(flops=int(flops), transcendentals=0,
                           bytes_accessed=int(bytes_accessed))

    out = pl.pallas_call(
        _build_kernel(tuple(bias_slices), n_layers),
        out_shape=jax.ShapeDtypeStruct((padded_batch, out_pad), x2d.dtype),
        grid=grid,
        in_specs=in_specs,
        out_specs=out_spec,
        compiler_params=pltpu.CompilerParams(
            dimension_semantics=("parallel",),      # megacore sharding on v7x
            vmem_limit_bytes=vmem_limit,
        ),
        cost_estimate=cost,
    )(*operands)

    return out[:batch, :out_dim]


def make_params(key, in_channels, hidden_channels, out_channels, dtype=jnp.float32):
    """Deterministically initialize the 12 linear layers (fc1..fc12).

    Weights stored as (in_features, out_features) so h @ W + b matches
    PyTorch's x @ W_pt.T + b. Pass dtype=jnp.bfloat16 on v6e/v7x for
    MXU-native matmuls (accumulation stays f32 in the kernel).
    """
    dims = [
        in_channels,
        hidden_channels,
        hidden_channels * 2,
        hidden_channels * 4,
        hidden_channels * 8,
        hidden_channels * 16,
        hidden_channels * 32,
        hidden_channels * 16,
        hidden_channels * 8,
        hidden_channels * 4,
        hidden_channels * 2,
        hidden_channels,
        out_channels,
    ]
    weights, biases = [], []
    for i in range(len(dims) - 1):
        key, kw, kb = jax.random.split(key, 3)
        fan_in, fan_out = dims[i], dims[i + 1]
        bound = 1.0 / jnp.sqrt(jnp.float32(fan_in))
        w = jax.random.uniform(kw, (fan_in, fan_out), jnp.float32, -bound, bound)
        b = jax.random.uniform(kb, (fan_out,), jnp.float32, -bound, bound)
        weights.append(w.astype(dtype))
        biases.append(b.astype(dtype))
    return weights, biases


def reference_forward(x, weights, biases):
    """Pure-JAX reference of the same forward pass (for correctness check)."""
    if x.ndim == 3:
        h = jnp.squeeze(x, axis=1)
    else:
        h = x
    h = h.astype(jnp.float32)
    n = len(weights)
    for i, (w, b) in enumerate(zip(weights, biases)):
        h = h @ w.astype(jnp.float32) + b.astype(jnp.float32)
        if i < n - 1:
            h = jnp.where(h > 0, h, LEAKY_SLOPE * h)
    return h.astype(x.dtype)


if __name__ == "__main__":
    key = jax.random.PRNGKey(0)
    key, kx = jax.random.split(key)

    batch = 8
    in_channels = 16
    hidden_channels = 8
    out_channels = 4

    x = jax.random.normal(kx, (batch, 1, in_channels), jnp.float32)
    weights, biases = make_params(key, in_channels, hidden_channels, out_channels)

    out = thermonet_linear_forward(x, weights, biases)
    out = jax.block_until_ready(out)

    ref = reference_forward(x, weights, biases)
    assert out.shape == (batch, out_channels), f"bad shape {out.shape}"
    assert jnp.allclose(out, ref, atol=1e-4, rtol=1e-4), "mismatch vs JAX reference"

    print("KERNEL_OK")
</pallas_src>

<mosaic_0001>
module attributes {stable_mosaic.version = 11 : i64} {
  func.func @kernel(%arg0: i32, %arg1: memref<8x128xf32, #tpu.memory_space<vmem>>, %arg2: memref<1x1664xf32, #tpu.memory_space<vmem>>, %arg3: memref<128x128xf32, #tpu.memory_space<vmem>>, %arg4: memref<128x128xf32, #tpu.memory_space<vmem>>, %arg5: memref<128x128xf32, #tpu.memory_space<vmem>>, %arg6: memref<128x128xf32, #tpu.memory_space<vmem>>, %arg7: memref<128x128xf32, #tpu.memory_space<vmem>>, %arg8: memref<128x256xf32, #tpu.memory_space<vmem>>, %arg9: memref<256x128xf32, #tpu.memory_space<vmem>>, %arg10: memref<128x128xf32, #tpu.memory_space<vmem>>, %arg11: memref<128x128xf32, #tpu.memory_space<vmem>>, %arg12: memref<128x128xf32, #tpu.memory_space<vmem>>, %arg13: memref<128x128xf32, #tpu.memory_space<vmem>>, %arg14: memref<128x128xf32, #tpu.memory_space<vmem>>, %arg15: memref<8x128xf32, #tpu.memory_space<vmem>>) attributes {dimension_semantics = [#tpu.dimension_semantics<parallel>], iteration_bounds = array<i64: 1>, scalar_prefetch = 0 : i64, scratch_operands = 0 : i64, tpu.core_type = #tpu.core_type<tc>, window_params = [{transform_indices = @transform_0, window_bounds = array<i64: 8, 128>}, {pipeline_mode = #tpu.pipeline_mode<synchronous>, transform_indices = @transform_1, window_bounds = array<i64: 1, 1664>}, {pipeline_mode = #tpu.pipeline_mode<synchronous>, transform_indices = @transform_2, window_bounds = array<i64: 128, 128>}, {pipeline_mode = #tpu.pipeline_mode<synchronous>, transform_indices = @transform_3, window_bounds = array<i64: 128, 128>}, {pipeline_mode = #tpu.pipeline_mode<synchronous>, transform_indices = @transform_4, window_bounds = array<i64: 128, 128>}, {pipeline_mode = #tpu.pipeline_mode<synchronous>, transform_indices = @transform_5, window_bounds = array<i64: 128, 128>}, {pipeline_mode = #tpu.pipeline_mode<synchronous>, transform_indices = @transform_6, window_bounds = array<i64: 128, 128>}, {pipeline_mode = #tpu.pipeline_mode<synchronous>, transform_indices = @transform_7, window_bounds = array<i64: 128, 256>}, {pipeline_mode = #tpu.pipeline_mode<synchronous>, transform_indices = @transform_8, window_bounds = array<i64: 256, 128>}, {pipeline_mode = #tpu.pipeline_mode<synchronous>, transform_indices = @transform_9, window_bounds = array<i64: 128, 128>}, {pipeline_mode = #tpu.pipeline_mode<synchronous>, transform_indices = @transform_10, window_bounds = array<i64: 128, 128>}, {pipeline_mode = #tpu.pipeline_mode<synchronous>, transform_indices = @transform_11, window_bounds = array<i64: 128, 128>}, {pipeline_mode = #tpu.pipeline_mode<synchronous>, transform_indices = @transform_12, window_bounds = array<i64: 128, 128>}, {pipeline_mode = #tpu.pipeline_mode<synchronous>, transform_indices = @transform_13, window_bounds = array<i64: 128, 128>}, {transform_indices = @transform_14, window_bounds = array<i64: 8, 128>}]} {
    %c0 = arith.constant 0 : index
    %c0_0 = arith.constant 0 : index
    %0 = vector.load %arg1[%c0, %c0_0] : memref<8x128xf32, #tpu.memory_space<vmem>>, vector<8x128xf32>
    %c0_1 = arith.constant 0 : index
    %c0_2 = arith.constant 0 : index
    %1 = vector.load %arg3[%c0_1, %c0_2] : memref<128x128xf32, #tpu.memory_space<vmem>>, vector<128x128xf32>
    %c0_3 = arith.constant 0 : index
    %c0_4 = arith.constant 0 : index
    %2 = vector.load %arg2[%c0_3, %c0_4] : memref<1x1664xf32, #tpu.memory_space<vmem>>, vector<1x128xf32>
    %cst = arith.constant dense<0.000000e+00> : vector<8x128xf32>
    %3 = tpu.matmul %0, %1, %cst {dimension_numbers = #tpu.dot_dimension_numbers<[1], [0], [0], [1], [0, 0, 1, 1], [], []>} : vector<8x128xf32>, vector<128x128xf32>, vector<8x128xf32> -> vector<8x128xf32>
    %4 = vector.broadcast %2 : vector<1x128xf32> to vector<8x128xf32>
    %5 = arith.addf %3, %4 : vector<8x128xf32>
    %cst_5 = arith.constant 0.00999999977 : f32
    %6 = vector.broadcast %cst_5 : f32 to vector<8x128xf32>
    %7 = arith.mulf %6, %5 : vector<8x128xf32>
    %8 = arith.maximumf %5, %7 : vector<8x128xf32>
    %c0_6 = arith.constant 0 : index
    %c0_7 = arith.constant 0 : index
    %9 = vector.load %arg4[%c0_6, %c0_7] : memref<128x128xf32, #tpu.memory_space<vmem>>, vector<128x128xf32>
    %c0_8 = arith.constant 0 : index
    %c128 = arith.constant 128 : index
    %10 = vector.load %arg2[%c0_8, %c128] : memref<1x1664xf32, #tpu.memory_space<vmem>>, vector<1x128xf32>
    %cst_9 = arith.constant dense<0.000000e+00> : vector<8x128xf32>
    %11 = tpu.matmul %8, %9, %cst_9 {dimension_numbers = #tpu.dot_dimension_numbers<[1], [0], [0], [1], [0, 0, 1, 1], [], []>} : vector<8x128xf32>, vector<128x128xf32>, vector<8x128xf32> -> vector<8x128xf32>
    %12 = vector.broadcast %10 : vector<1x128xf32> to vector<8x128xf32>
    %13 = arith.addf %11, %12 : vector<8x128xf32>
    %cst_10 = arith.constant 0.00999999977 : f32
    %14 = vector.broadcast %cst_10 : f32 to vector<8x128xf32>
    %15 = arith.mulf %14, %13 : vector<8x128xf32>
    %16 = arith.maximumf %13, %15 : vector<8x128xf32>
    %c0_11 = arith.constant 0 : index
    %c0_12 = arith.constant 0 : index
    %17 = vector.load %arg5[%c0_11, %c0_12] : memref<128x128xf32, #tpu.memory_space<vmem>>, vector<128x128xf32>
    %c0_13 = arith.constant 0 : index
    %c256 = arith.constant 256 : index
    %18 = vector.load %arg2[%c0_13, %c256] : memref<1x1664xf32, #tpu.memory_space<vmem>>, vector<1x128xf32>
    %cst_14 = arith.constant dense<0.000000e+00> : vector<8x128xf32>
    %19 = tpu.matmul %16, %17, %cst_14 {dimension_numbers = #tpu.dot_dimension_numbers<[1], [0], [0], [1], [0, 0, 1, 1], [], []>} : vector<8x128xf32>, vector<128x128xf32>, vector<8x128xf32> -> vector<8x128xf32>
    %20 = vector.broadcast %18 : vector<1x128xf32> to vector<8x128xf32>
    %21 = arith.addf %19, %20 : vector<8x128xf32>
    %cst_15 = arith.constant 0.00999999977 : f32
    %22 = vector.broadcast %cst_15 : f32 to vector<8x128xf32>
    %23 = arith.mulf %22, %21 : vector<8x128xf32>
    %24 = arith.maximumf %21, %23 : vector<8x128xf32>
    %c0_16 = arith.constant 0 : index
    %c0_17 = arith.constant 0 : index
    %25 = vector.load %arg6[%c0_16, %c0_17] : memref<128x128xf32, #tpu.memory_space<vmem>>, vector<128x128xf32>
    %c0_18 = arith.constant 0 : index
    %c384 = arith.constant 384 : index
    %26 = vector.load %arg2[%c0_18, %c384] : memref<1x1664xf32, #tpu.memory_space<vmem>>, vector<1x128xf32>
    %cst_19 = arith.constant dense<0.000000e+00> : vector<8x128xf32>
    %27 = tpu.matmul %24, %25, %cst_19 {dimension_numbers = #tpu.dot_dimension_numbers<[1], [0], [0], [1], [0, 0, 1, 1], [], []>} : vector<8x128xf32>, vector<128x128xf32>, vector<8x128xf32> -> vector<8x128xf32>
    %28 = vector.broadcast %26 : vector<1x128xf32> to vector<8x128xf32>
    %29 = arith.addf %27, %28 : vector<8x128xf32>
    %cst_20 = arith.constant 0.00999999977 : f32
    %30 = vector.broadcast %cst_20 : f32 to vector<8x128xf32>
    %31 = arith.mulf %30, %29 : vector<8x128xf32>
    %32 = arith.maximumf %29, %31 : vector<8x128xf32>
    %c0_21 = arith.constant 0 : index
    %c0_22 = arith.constant 0 : index
    %33 = vector.load %arg7[%c0_21, %c0_22] : memref<128x128xf32, #tpu.memory_space<vmem>>, vector<128x128xf32>
    %c0_23 = arith.constant 0 : index
    %c512 = arith.constant 512 : index
    %34 = vector.load %arg2[%c0_23, %c512] : memref<1x1664xf32, #tpu.memory_space<vmem>>, vector<1x128xf32>
    %cst_24 = arith.constant dense<0.000000e+00> : vector<8x128xf32>
    %35 = tpu.matmul %32, %33, %cst_24 {dimension_numbers = #tpu.dot_dimension_numbers<[1], [0], [0], [1], [0, 0, 1, 1], [], []>} : vector<8x128xf32>, vector<128x128xf32>, vector<8x128xf32> -> vector<8x128xf32>
    %36 = vector.broadcast %34 : vector<1x128xf32> to vector<8x128xf32>
    %37 = arith.addf %35, %36 : vector<8x128xf32>
    %cst_25 = arith.constant 0.00999999977 : f32
    %38 = vector.broadcast %cst_25 : f32 to vector<8x128xf32>
    %39 = arith.mulf %38, %37 : vector<8x128xf32>
    %40 = arith.maximumf %37, %39 : vector<8x128xf32>
    %c0_26 = arith.constant 0 : index
    %c0_27 = arith.constant 0 : index
    %41 = vector.load %arg8[%c0_26, %c0_27] : memref<128x256xf32, #tpu.memory_space<vmem>>, vector<128x256xf32>
    %c0_28 = arith.constant 0 : index
    %c640 = arith.constant 640 : index
    %42 = vector.load %arg2[%c0_28, %c640] : memref<1x1664xf32, #tpu.memory_space<vmem>>, vector<1x256xf32>
    %cst_29 = arith.constant dense<0.000000e+00> : vector<8x256xf32>
    %43 = tpu.matmul %40, %41, %cst_29 {dimension_numbers = #tpu.dot_dimension_numbers<[1], [0], [0], [1], [0, 0, 1, 1], [], []>} : vector<8x128xf32>, vector<128x256xf32>, vector<8x256xf32> -> vector<8x256xf32>
    %44 = vector.broadcast %42 : vector<1x256xf32> to vector<8x256xf32>
    %45 = arith.addf %43, %44 : vector<8x256xf32>
    %cst_30 = arith.constant 0.00999999977 : f32
    %46 = vector.broadcast %cst_30 : f32 to vector<8x256xf32>
    %47 = arith.mulf %46, %45 : vector<8x256xf32>
    %48 = arith.maximumf %45, %47 : vector<8x256xf32>
    %c0_31 = arith.constant 0 : index
    %c0_32 = arith.constant 0 : index
    %49 = vector.load %arg9[%c0_31, %c0_32] : memref<256x128xf32, #tpu.memory_space<vmem>>, vector<256x128xf32>
    %c0_33 = arith.constant 0 : index
    %c896 = arith.constant 896 : index
    %50 = vector.load %arg2[%c0_33, %c896] : memref<1x1664xf32, #tpu.memory_space<vmem>>, vector<1x128xf32>
    %cst_34 = arith.constant dense<0.000000e+00> : vector<8x128xf32>
    %51 = tpu.matmul %48, %49, %cst_34 {dimension_numbers = #tpu.dot_dimension_numbers<[1], [0], [0], [1], [0, 0, 1, 1], [], []>} : vector<8x256xf32>, vector<256x128xf32>, vector<8x128xf32> -> vector<8x128xf32>
    %52 = vector.broadcast %50 : vector<1x128xf32> to vector<8x128xf32>
    %53 = arith.addf %51, %52 : vector<8x128xf32>
    %cst_35 = arith.constant 0.00999999977 : f32
    %54 = vector.broadcast %cst_35 : f32 to vector<8x128xf32>
    %55 = arith.mulf %54, %53 : vector<8x128xf32>
    %56 = arith.maximumf %53, %55 : vector<8x128xf32>
    %c0_36 = arith.constant 0 : index
    %c0_37 = arith.constant 0 : index
    %57 = vector.load %arg10[%c0_36, %c0_37] : memref<128x128xf32, #tpu.memory_space<vmem>>, vector<128x128xf32>
    %c0_38 = arith.constant 0 : index
    %c1024 = arith.constant 1024 : index
    %58 = vector.load %arg2[%c0_38, %c1024] : memref<1x1664xf32, #tpu.memory_space<vmem>>, vector<1x128xf32>
    %cst_39 = arith.constant dense<0.000000e+00> : vector<8x128xf32>
    %59 = tpu.matmul %56, %57, %cst_39 {dimension_numbers = #tpu.dot_dimension_numbers<[1], [0], [0], [1], [0, 0, 1, 1], [], []>} : vector<8x128xf32>, vector<128x128xf32>, vector<8x128xf32> -> vector<8x128xf32>
    %60 = vector.broadcast %58 : vector<1x128xf32> to vector<8x128xf32>
    %61 = arith.addf %59, %60 : vector<8x128xf32>
    %cst_40 = arith.constant 0.00999999977 : f32
    %62 = vector.broadcast %cst_40 : f32 to vector<8x128xf32>
    %63 = arith.mulf %62, %61 : vector<8x128xf32>
    %64 = arith.maximumf %61, %63 : vector<8x128xf32>
    %c0_41 = arith.constant 0 : index
    %c0_42 = arith.constant 0 : index
    %65 = vector.load %arg11[%c0_41, %c0_42] : memref<128x128xf32, #tpu.memory_space<vmem>>, vector<128x128xf32>
    %c0_43 = arith.constant 0 : index
    %c1152 = arith.constant 1152 : index
    %66 = vector.load %arg2[%c0_43, %c1152] : memref<1x1664xf32, #tpu.memory_space<vmem>>, vector<1x128xf32>
    %cst_44 = arith.constant dense<0.000000e+00> : vector<8x128xf32>
    %67 = tpu.matmul %64, %65, %cst_44 {dimension_numbers = #tpu.dot_dimension_numbers<[1], [0], [0], [1], [0, 0, 1, 1], [], []>} : vector<8x128xf32>, vector<128x128xf32>, vector<8x128xf32> -> vector<8x128xf32>
    %68 = vector.broadcast %66 : vector<1x128xf32> to vector<8x128xf32>
    %69 = arith.addf %67, %68 : vector<8x128xf32>
    %cst_45 = arith.constant 0.00999999977 : f32
    %70 = vector.broadcast %cst_45 : f32 to vector<8x128xf32>
    %71 = arith.mulf %70, %69 : vector<8x128xf32>
    %72 = arith.maximumf %69, %71 : vector<8x128xf32>
    %c0_46 = arith.constant 0 : index
    %c0_47 = arith.constant 0 : index
    %73 = vector.load %arg12[%c0_46, %c0_47] : memref<128x128xf32, #tpu.memory_space<vmem>>, vector<128x128xf32>
    %c0_48 = arith.constant 0 : index
    %c1280 = arith.constant 1280 : index
    %74 = vector.load %arg2[%c0_48, %c1280] : memref<1x1664xf32, #tpu.memory_space<vmem>>, vector<1x128xf32>
    %cst_49 = arith.constant dense<0.000000e+00> : vector<8x128xf32>
    %75 = tpu.matmul %72, %73, %cst_49 {dimension_numbers = #tpu.dot_dimension_numbers<[1], [0], [0], [1], [0, 0, 1, 1], [], []>} : vector<8x128xf32>, vector<128x128xf32>, vector<8x128xf32> -> vector<8x128xf32>
    %76 = vector.broadcast %74 : vector<1x128xf32> to vector<8x128xf32>
    %77 = arith.addf %75, %76 : vector<8x128xf32>
    %cst_50 = arith.constant 0.00999999977 : f32
    %78 = vector.broadcast %cst_50 : f32 to vector<8x128xf32>
    %79 = arith.mulf %78, %77 : vector<8x128xf32>
    %80 = arith.maximumf %77, %79 : vector<8x128xf32>
    %c0_51 = arith.constant 0 : index
    %c0_52 = arith.constant 0 : index
    %81 = vector.load %arg13[%c0_51, %c0_52] : memref<128x128xf32, #tpu.memory_space<vmem>>, vector<128x128xf32>
    %c0_53 = arith.constant 0 : index
    %c1408 = arith.constant 1408 : index
    %82 = vector.load %arg2[%c0_53, %c1408] : memref<1x1664xf32, #tpu.memory_space<vmem>>, vector<1x128xf32>
    %cst_54 = arith.constant dense<0.000000e+00> : vector<8x128xf32>
    %83 = tpu.matmul %80, %81, %cst_54 {dimension_numbers = #tpu.dot_dimension_numbers<[1], [0], [0], [1], [0, 0, 1, 1], [], []>} : vector<8x128xf32>, vector<128x128xf32>, vector<8x128xf32> -> vector<8x128xf32>
    %84 = vector.broadcast %82 : vector<1x128xf32> to vector<8x128xf32>
    %85 = arith.addf %83, %84 : vector<8x128xf32>
    %cst_55 = arith.constant 0.00999999977 : f32
    %86 = vector.broadcast %cst_55 : f32 to vector<8x128xf32>
    %87 = arith.mulf %86, %85 : vector<8x128xf32>
    %88 = arith.maximumf %85, %87 : vector<8x128xf32>
    %c0_56 = arith.constant 0 : index
    %c0_57 = arith.constant 0 : index
    %89 = vector.load %arg14[%c0_56, %c0_57] : memref<128x128xf32, #tpu.memory_space<vmem>>, vector<128x128xf32>
    %c0_58 = arith.constant 0 : index
    %c1536 = arith.constant 1536 : index
    %90 = vector.load %arg2[%c0_58, %c1536] : memref<1x1664xf32, #tpu.memory_space<vmem>>, vector<1x128xf32>
    %cst_59 = arith.constant dense<0.000000e+00> : vector<8x128xf32>
    %91 = tpu.matmul %88, %89, %cst_59 {dimension_numbers = #tpu.dot_dimension_numbers<[1], [0], [0], [1], [0, 0, 1, 1], [], []>} : vector<8x128xf32>, vector<128x128xf32>, vector<8x128xf32> -> vector<8x128xf32>
    %92 = vector.broadcast %90 : vector<1x128xf32> to vector<8x128xf32>
    %93 = arith.addf %91, %92 : vector<8x128xf32>
    %c0_60 = arith.constant 0 : index
    %c0_61 = arith.constant 0 : index
    %94 = vector.load %arg15[%c0_60, %c0_61] : memref<8x128xf32, #tpu.memory_space<vmem>>, vector<8x128xf32>
    tpu.vector_store %arg15[%c0_60, %c0_61], %93 {strides = array<i32>} : memref<8x128xf32, #tpu.memory_space<vmem>>, vector<8x128xf32>,
    return
  }
  func.func @transform_0(%arg0: i32) -> (i32, i32) {
    %c0_i32 = arith.constant 0 : i32
    %c0_i32_0 = arith.constant 0 : i32
    return %arg0, %c0_i32 : i32, i32
  }
  func.func @transform_1(%arg0: i32) -> (i32, i32) {
    %c0_i32 = arith.constant 0 : i32
    %c0_i32_0 = arith.constant 0 : i32
    %c0_i32_1 = arith.constant 0 : i32
    return %c0_i32, %c0_i32_0 : i32, i32
  }
  func.func @transform_2(%arg0: i32) -> (i32, i32) {
    %c0_i32 = arith.constant 0 : i32
    %c0_i32_0 = arith.constant 0 : i32
    %c0_i32_1 = arith.constant 0 : i32
    return %c0_i32, %c0_i32_0 : i32, i32
  }
  func.func @transform_3(%arg0: i32) -> (i32, i32) {
    %c0_i32 = arith.constant 0 : i32
    %c0_i32_0 = arith.constant 0 : i32
    %c0_i32_1 = arith.constant 0 : i32
    return %c0_i32, %c0_i32_0 : i32, i32
  }
  func.func @transform_4(%arg0: i32) -> (i32, i32) {
    %c0_i32 = arith.constant 0 : i32
    %c0_i32_0 = arith.constant 0 : i32
    %c0_i32_1 = arith.constant 0 : i32
    return %c0_i32, %c0_i32_0 : i32, i32
  }
  func.func @transform_5(%arg0: i32) -> (i32, i32) {
    %c0_i32 = arith.constant 0 : i32
    %c0_i32_0 = arith.constant 0 : i32
    %c0_i32_1 = arith.constant 0 : i32
    return %c0_i32, %c0_i32_0 : i32, i32
  }
  func.func @transform_6(%arg0: i32) -> (i32, i32) {
    %c0_i32 = arith.constant 0 : i32
    %c0_i32_0 = arith.constant 0 : i32
    %c0_i32_1 = arith.constant 0 : i32
    return %c0_i32, %c0_i32_0 : i32, i32
  }
  func.func @transform_7(%arg0: i32) -> (i32, i32) {
    %c0_i32 = arith.constant 0 : i32
    %c0_i32_0 = arith.constant 0 : i32
    %c0_i32_1 = arith.constant 0 : i32
    return %c0_i32, %c0_i32_0 : i32, i32
  }
  func.func @transform_8(%arg0: i32) -> (i32, i32) {
    %c0_i32 = arith.constant 0 : i32
    %c0_i32_0 = arith.constant 0 : i32
    %c0_i32_1 = arith.constant 0 : i32
    return %c0_i32, %c0_i32_0 : i32, i32
  }
  func.func @transform_9(%arg0: i32) -> (i32, i32) {
    %c0_i32 = arith.constant 0 : i32
    %c0_i32_0 = arith.constant 0 : i32
    %c0_i32_1 = arith.constant 0 : i32
    return %c0_i32, %c0_i32_0 : i32, i32
  }
  func.func @transform_10(%arg0: i32) -> (i32, i32) {
    %c0_i32 = arith.constant 0 : i32
    %c0_i32_0 = arith.constant 0 : i32
    %c0_i32_1 = arith.constant 0 : i32
    return %c0_i32, %c0_i32_0 : i32, i32
  }
  func.func @transform_11(%arg0: i32) -> (i32, i32) {
    %c0_i32 = arith.constant 0 : i32
    %c0_i32_0 = arith.constant 0 : i32
    %c0_i32_1 = arith.constant 0 : i32
    return %c0_i32, %c0_i32_0 : i32, i32
  }
  func.func @transform_12(%arg0: i32) -> (i32, i32) {
    %c0_i32 = arith.constant 0 : i32
    %c0_i32_0 = arith.constant 0 : i32
    %c0_i32_1 = arith.constant 0 : i32
    return %c0_i32, %c0_i32_0 : i32, i32
  }
  func.func @transform_13(%arg0: i32) -> (i32, i32) {
    %c0_i32 = arith.constant 0 : i32
    %c0_i32_0 = arith.constant 0 : i32
    %c0_i32_1 = arith.constant 0 : i32
    return %c0_i32, %c0_i32_0 : i32, i32
  }
  func.func @transform_14(%arg0: i32) -> (i32, i32) {
    %c0_i32 = arith.constant 0 : i32
    %c0_i32_0 = arith.constant 0 : i32
    return %arg0, %c0_i32 : i32, i32
  }
}

</mosaic_0001>

<bundles_post_ra>
// kernel: tpu_custom_call.1
= control target key start
LH: loop header
LB: loop body
LE: loop exit
PB: predicated region body
PF: predicated region fallthrough
CT: control target
= control target key end

     0   :  { %19 = vsyncpa [#allocation3], 0  ;;  %s3122_s0 = inlined_call_operand.hbm [shape: f32[8,128], index: 0, kind: input, shape index: {}]   ;;  %s3123_s1 = inlined_call_operand.hbm [shape: f32[1,1664], index: 1, kind: input, shape index: {}]   ;;  %s3124_s2 = inlined_call_operand.hbm [shape: f32[128,128], index: 2, kind: input, shape index: {}]   ;;  %s3125_s3 = inlined_call_operand.hbm [shape: f32[128,128], index: 3, kind: input, shape index: {}]   ;;  %s3126_s4 = inlined_call_operand.hbm [shape: f32[128,128], index: 4, kind: input, shape index: {}]   ;;  %s3127_s5 = inlined_call_operand.hbm [shape: f32[128,128], index: 5, kind: input, shape index: {}]   ;;  %s3128_s6 = inlined_call_operand.hbm [shape: f32[128,128], index: 6, kind: input, shape index: {}]   ;;  %s3129_s7 = inlined_call_operand.hbm [shape: f32[128,256], index: 7, kind: input, shape index: {}]   ;;  %s3130_s8 = inlined_call_operand.hbm [shape: f32[256,128], index: 8, kind: input, shape index: {}]   ;;  %s3131_s9 = inlined_call_operand.hbm [shape: f32[128,128], index: 9, kind: input, shape index: {}]   ;;  %s3132_s10 = inlined_call_operand.hbm [shape: f32[128,128], index: 10, kind: input, shape index: {}]   ;;  %s3133_s11 = inlined_call_operand.hbm [shape: f32[128,128], index: 11, kind: input, shape index: {}]   ;;  %s3134_s12 = inlined_call_operand.hbm [shape: f32[128,128], index: 12, kind: input, shape index: {}]   ;;  %s3135_s13 = inlined_call_operand.hbm [shape: f32[128,128], index: 13, kind: input, shape index: {}]   ;;  %s3136_s14 = inlined_call_operand.hbm [shape: f32[8,128], index: 14, kind: output, shape index: {}]  }
   0x1   :  { %20 = vsyncpa [#allocation6], 0 }
   0x2   :  { %21 = vsyncpa [#allocation9], 0 }
   0x3   :  { %22 = vsyncpa [#allocation12], 0 }
   0x4   :  { %23 = vsyncpa [#allocation15], 0 }
   0x5   :  { %24 = vsyncpa [#allocation18], 0 }
   0x6   :  { %25 = vsyncpa [#allocation21], 0 }
   0x7   :  { %26 = vsyncpa [#allocation24], 0 }
   0x8   :  { %27 = vsyncpa [#allocation4], 0  ;;  %s2676_s29 = smov [#allocation5]   ;;  %s2328_s17 = scalar_lea.hbm %s3123_s1, 208 }
   0x9   :  { %s44_s30 = sshll.u32 %s2676_s29, 4  ;;  %p2329_p0 = scmp.ne.s32.totalorder %s3123_s1, %s2328_s17  ;;  %s45_s30 = int_to_ptr.vmem [resolvable:$true] %s44_s30 }
   0xa   :  { %p2332_p1 = scmp.lt.u32.totalorder %s2328_s17, %s3123_s1 }
   0xc   :  { %p2334_p2 = pnand %p2332_p1, %p2329_p0 }
   0xe   :  { %2337 = shalt.err (!%p2334_p2)
}
   0xf   :  { %s2338_s22 = scalar_lea.vmem %s45_s30, 208  ;;  %s2342_s23 = scalar_lea.vmem %s45_s30, 224 }
  0x10   :  { %p2339_p3 = scmp.ne.s32.totalorder %s45_s30, %s2338_s22  ;;  %p2343_p4 = scmp.lt.s32.totalorder %s45_s30, %s45_s30 }
  0x11   :  { %p2344_p5 = scmp.lt.s32.totalorder %s2342_s23, %s2338_s22 }
  0x13   :  { %p2345_p6 = por %p2344_p5, %p2343_p4 }
  0x15   :  { %p2346_p7 = pnand %p2345_p6, %p2339_p3 }
  0x17   :  { %2349 = shalt.err (!%p2346_p7)
}
  0x18   :  { %47 = dma.hbm_to_vmem [thread:$0]  %s3123_s1, 208, %s45_s30, [#allocation6]  }
  0x19   :  { %s2677_s26 = smov [#allocation8]   ;;  %s2678_s28 = smov [#allocation11]  }
  0x1a   :  { %s65_s27 = sshll.u32 %s2677_s26, 4  ;;  %s89_s29 = sshll.u32 %s2678_s28, 4  ;;  %s66_s27 = int_to_ptr.vmem [resolvable:$true] %s65_s27  ;;  %s90_s29 = int_to_ptr.vmem [resolvable:$true] %s89_s29 }
  0x1b   :  { %s2350_s17 = scalar_lea.hbm %s3125_s3, 2048 }
  0x1c   :  { %p2351_p8 = scmp.ne.s32.totalorder %s3125_s3, %s2350_s17  ;;  %p2354_p9 = scmp.lt.u32.totalorder %s2350_s17, %s3125_s3 }
  0x1e   :  { %p2356_p10 = pnand %p2354_p9, %p2351_p8 }
  0x20   :  { %2359 = shalt.err (!%p2356_p10)
}
  0x21   :  { %s2360_s1 = scalar_lea.vmem %s66_s27, 2048  ;;  %p2365_p12 = scmp.lt.s32.totalorder %s66_s27, %s66_s27 }
  0x22   :  { %p2361_p11 = scmp.ne.s32.totalorder %s66_s27, %s2360_s1  ;;  %p2366_p13 = scmp.lt.s32.totalorder %s2360_s1, %s2360_s1 }
  0x24   :  { %p2367_p0 = por %p2366_p13, %p2365_p12 }
  0x26   :  { %p2368_p1 = pnand %p2367_p0, %p2361_p11 }
  0x28   :  { %2371 = shalt.err (!%p2368_p1)
}
  0x29   :  { %s2679_s30 = smov 128   ;;  %s2680_s22 = smov 8  }
  0x2a   :  { %71 = dma.hbm_to_vmem [thread:$0]  %s3125_s3, 2048, %s66_s27, [#allocation9], %s2679_s30, %s2679_s30, %s2680_s22  }
  0x2b   :  { %s2372_s28 = scalar_lea.hbm %s3127_s5, 2048 }
  0x2c   :  { %p2373_p2 = scmp.ne.s32.totalorder %s3127_s5, %s2372_s28  ;;  %p2376_p3 = scmp.lt.u32.totalorder %s2372_s28, %s3127_s5 }
  0x2e   :  { %p2378_p4 = pnand %p2376_p3, %p2373_p2 }
  0x30   :  { %2381 = shalt.err (!%p2378_p4)
}
  0x31   :  { %s2382_s19 = scalar_lea.vmem %s90_s29, 2048  ;;  %p2387_p6 = scmp.lt.s32.totalorder %s90_s29, %s90_s29 }
  0x32   :  { %p2383_p5 = scmp.ne.s32.totalorder %s90_s29, %s2382_s19  ;;  %p2388_p7 = scmp.lt.s32.totalorder %s2382_s19, %s2382_s19 }
  0x34   :  { %p2389_p8 = por %p2388_p7, %p2387_p6 }
  0x36   :  { %p2390_p9 = pnand %p2389_p8, %p2383_p5 }
  0x38   :  { %2393 = shalt.err (!%p2390_p9)
}
  0x39   :  { %95 = dma.hbm_to_vmem [thread:$0]  %s3127_s5, 2048, %s90_s29, [#allocation12], %s2679_s30, %s2679_s30, %s2680_s22  }
  0x3a   :  { %s2681_s20 = smov [#allocation14]   ;;  %s2394_s24 = scalar_lea.hbm %s3129_s7, 4096 }
  0x3b   :  { %s113_s21 = sshll.u32 %s2681_s20, 4  ;;  %p2395_p10 = scmp.ne.s32.totalorder %s3129_s7, %s2394_s24  ;;  %s114_s21 = int_to_ptr.vmem [resolvable:$true] %s113_s21 }
  0x3c   :  { %p2398_p11 = scmp.lt.u32.totalorder %s2394_s24, %s3129_s7 }
  0x3e   :  { %p2400_p12 = pnand %p2398_p11, %p2395_p10 }
  0x40   :  { %2403 = shalt.err (!%p2400_p12)
}
  0x41   :  { %s2404_s16 = scalar_lea.vmem %s114_s21, 4096  ;;  %p2409_p0 = scmp.lt.s32.totalorder %s114_s21, %s114_s21 }
  0x42   :  { %p2405_p13 = scmp.ne.s32.totalorder %s114_s21, %s2404_s16  ;;  %p2410_p1 = scmp.lt.s32.totalorder %s2404_s16, %s2404_s16 }
  0x44   :  { %p2411_p2 = por %p2410_p1, %p2409_p0 }
  0x46   :  { %p2412_p3 = pnand %p2411_p2, %p2405_p13 }
  0x48   :  { %2415 = shalt.err (!%p2412_p3)
}
  0x49   :  { %s2682_s5 = smov 256   ;;  %s2683_s29 = smov 16  }
  0x4a   :  { %119 = dma.hbm_to_vmem [thread:$0]  %s3129_s7, 4096, %s114_s21, [#allocation15], %s2682_s5, %s2682_s5, %s2683_s29  }
  0x4b   :  { %s2684_s19 = smov [#allocation17]   ;;  %s2685_s27 = smov [#allocation20]  }
  0x4c   :  { %s137_s3 = sshll.u32 %s2684_s19, 4  ;;  %s161_s20 = sshll.u32 %s2685_s27, 4  ;;  %s138_s3 = int_to_ptr.vmem [resolvable:$true] %s137_s3  ;;  %s2827_s20 = int_to_ptr.vmem [resolvable:$true] %s161_s20 }
  0x4d   :  { %s2416_s24 = scalar_lea.hbm %s3131_s9, 2048 }
  0x4e   :  { %p2417_p4 = scmp.ne.s32.totalorder %s3131_s9, %s2416_s24  ;;  %p2420_p5 = scmp.lt.u32.totalorder %s2416_s24, %s3131_s9 }
  0x50   :  { %p2422_p6 = pnand %p2420_p5, %p2417_p4 }
  0x52   :  { %2425 = shalt.err (!%p2422_p6)
}
  0x53   :  { %s2426_s7 = scalar_lea.vmem %s138_s3, 2048  ;;  %p2431_p8 = scmp.lt.s32.totalorder %s138_s3, %s138_s3 }
  0x54   :  { %p2427_p7 = scmp.ne.s32.totalorder %s138_s3, %s2426_s7  ;;  %p2432_p9 = scmp.lt.s32.totalorder %s2426_s7, %s2426_s7 }
  0x56   :  { %p2433_p10 = por %p2432_p9, %p2431_p8 }
  0x58   :  { %p2434_p11 = pnand %p2433_p10, %p2427_p7 }
  0x5a   :  { %2437 = shalt.err (!%p2434_p11)
}
  0x5b   :  { %143 = dma.hbm_to_vmem [thread:$0]  %s3131_s9, 2048, %s138_s3, [#allocation18], %s2679_s30, %s2679_s30, %s2680_s22  }
  0x5c   :  { %s2438_s17 = scalar_lea.hbm %s3133_s11, 2048 }
  0x5d   :  { %p2439_p12 = scmp.ne.s32.totalorder %s3133_s11, %s2438_s17  ;;  %p2442_p13 = scmp.lt.u32.totalorder %s2438_s17, %s3133_s11 }
  0x5f   :  { %p2444_p0 = pnand %p2442_p13, %p2439_p12 }
  0x61   :  { %2447 = shalt.err (!%p2444_p0)
}
  0x62   :  { %s2448_s23 = scalar_lea.vmem %s2827_s20, 2048  ;;  %p2453_p2 = scmp.lt.s32.totalorder %s2827_s20, %s2827_s20 }
  0x63   :  { %p2449_p1 = scmp.ne.s32.totalorder %s2827_s20, %s2448_s23  ;;  %p2454_p3 = scmp.lt.s32.totalorder %s2448_s23, %s2448_s23 }
  0x65   :  { %p2455_p4 = por %p2454_p3, %p2453_p2 }
  0x67   :  { %p2456_p5 = pnand %p2455_p4, %p2449_p1 }
  0x69   :  { %2459 = shalt.err (!%p2456_p5)
}
  0x6a   :  { %167 = dma.hbm_to_vmem [thread:$0]  %s3133_s11, 2048, %s2827_s20, [#allocation21], %s2679_s30, %s2679_s30, %s2680_s22  }
  0x6b   :  { %s2686_s24 = smov [#allocation2]   ;;  %s2687_s26 = smov [#allocation7]  }
  0x6c   :  { %s34_s25 = sshll.u32 %s2686_s24, 4  ;;  %s53_s28 = sshll.u32 %s2687_s26, 4  ;;  %s35_s25 = int_to_ptr.vmem [resolvable:$true] %s34_s25  ;;  %s2864_s28 = int_to_ptr.vmem [resolvable:$true] %s53_s28 }
  0x6d   :  { %s2460_s21 = scalar_lea.hbm %s3122_s0, 128 }
  0x6e   :  { %p2461_p6 = scmp.ne.s32.totalorder %s3122_s0, %s2460_s21  ;;  %p2464_p7 = scmp.lt.u32.totalorder %s2460_s21, %s3122_s0 }
  0x70   :  { %p2466_p8 = pnand %p2464_p7, %p2461_p6 }
  0x72   :  { %2469 = shalt.err (!%p2466_p8)
}
  0x73   :  { %s2470_s11 = scalar_lea.vmem %s35_s25, 128  ;;  %p2475_p10 = scmp.lt.s32.totalorder %s35_s25, %s35_s25 }
  0x74   :  { %p2471_p9 = scmp.ne.s32.totalorder %s35_s25, %s2470_s11  ;;  %p2476_p11 = scmp.lt.s32.totalorder %s2470_s11, %s2470_s11 }
  0x76   :  { %p2477_p12 = por %p2476_p11, %p2475_p10 }
  0x78   :  { %p2478_p13 = pnand %p2477_p12, %p2471_p9 }
  0x7a   :  { %2481 = shalt.err (!%p2478_p13)
}
  0x7b   :  { %37 = dma.hbm_to_vmem [thread:$0]  %s3122_s0, 128, %s35_s25, [#allocation3]  }
  0x7c   :  { %s2482_s1 = scalar_lea.hbm %s3124_s2, 2048 }
  0x7d   :  { %p2483_p0 = scmp.ne.s32.totalorder %s3124_s2, %s2482_s1  ;;  %p2486_p1 = scmp.lt.u32.totalorder %s2482_s1, %s3124_s2 }
  0x7f   :  { %p2488_p2 = pnand %p2486_p1, %p2483_p0 }
  0x81   :  { %2491 = shalt.err (!%p2488_p2)
}
  0x82   :  { %s2492_s26 = scalar_lea.vmem %s2864_s28, 2048  ;;  %p2497_p4 = scmp.lt.s32.totalorder %s2864_s28, %s2864_s28 }
  0x83   :  { %p2493_p3 = scmp.ne.s32.totalorder %s2864_s28, %s2492_s26  ;;  %p2498_p5 = scmp.lt.s32.totalorder %s2492_s26, %s2492_s26 }
  0x85   :  { %p2499_p6 = por %p2498_p5, %p2497_p4 }
  0x87   :  { %p2500_p7 = pnand %p2499_p6, %p2493_p3 }
  0x89   :  { %2503 = shalt.err (!%p2500_p7)
}
  0x8a   :  { %59 = dma.hbm_to_vmem [thread:$0]  %s3124_s2, 2048, %s2864_s28, [#allocation6], %s2679_s30, %s2679_s30, %s2680_s22  }
  0x8b   :  { %s2688_s15 = smov [#allocation10]   ;;  %s2689_s21 = smov [#allocation13]  }
  0x8c   :  { %s77_s7 = sshll.u32 %s2688_s15, 4  ;;  %s101_s16 = sshll.u32 %s2689_s21, 4  ;;  %s78_s7 = int_to_ptr.vmem [resolvable:$true] %s77_s7  ;;  %s2898_s16 = int_to_ptr.vmem [resolvable:$true] %s101_s16 }
  0x8d   :  { %s2504_s17 = scalar_lea.hbm %s3126_s4, 2048 }
  0x8e   :  { %p2505_p8 = scmp.ne.s32.totalorder %s3126_s4, %s2504_s17  ;;  %p2508_p9 = scmp.lt.u32.totalorder %s2504_s17, %s3126_s4 }
  0x90   :  { %p2510_p10 = pnand %p2508_p9, %p2505_p8 }
  0x92   :  { %2513 = shalt.err (!%p2510_p10)
}
  0x93   :  { %s2514_s2 = scalar_lea.vmem %s78_s7, 2048  ;;  %p2519_p12 = scmp.lt.s32.totalorder %s78_s7, %s78_s7 }
  0x94   :  { %p2515_p11 = scmp.ne.s32.totalorder %s78_s7, %s2514_s2  ;;  %p2520_p13 = scmp.lt.s32.totalorder %s2514_s2, %s2514_s2 }
  0x96   :  { %p2521_p0 = por %p2520_p13, %p2519_p12 }
  0x98   :  { %p2522_p1 = pnand %p2521_p0, %p2515_p11 }
  0x9a   :  { %2525 = shalt.err (!%p2522_p1)
}
  0x9b   :  { %83 = dma.hbm_to_vmem [thread:$0]  %s3126_s4, 2048, %s78_s7, [#allocation9], %s2679_s30, %s2679_s30, %s2680_s22  }
  0x9c   :  { %s2526_s9 = scalar_lea.hbm %s3128_s6, 2048 }
  0x9d   :  { %p2527_p2 = scmp.ne.s32.totalorder %s3128_s6, %s2526_s9  ;;  %p2530_p3 = scmp.lt.u32.totalorder %s2526_s9, %s3128_s6 }
  0x9f   :  { %p2532_p4 = pnand %p2530_p3, %p2527_p2 }
  0xa1   :  { %2535 = shalt.err (!%p2532_p4)
}
  0xa2   :  { %s2536_s25 = scalar_lea.vmem %s2898_s16, 2048  ;;  %p2541_p6 = scmp.lt.s32.totalorder %s2898_s16, %s2898_s16 }
  0xa3   :  { %p2537_p5 = scmp.ne.s32.totalorder %s2898_s16, %s2536_s25  ;;  %p2542_p7 = scmp.lt.s32.totalorder %s2536_s25, %s2536_s25 }
  0xa5   :  { %p2543_p8 = por %p2542_p7, %p2541_p6 }
  0xa7   :  { %p2544_p9 = pnand %p2543_p8, %p2537_p5 }
  0xa9   :  { %2547 = shalt.err (!%p2544_p9)
}
  0xaa   :  { %107 = dma.hbm_to_vmem [thread:$0]  %s3128_s6, 2048, %s2898_s16, [#allocation12], %s2679_s30, %s2679_s30, %s2680_s22  }
  0xab   :  { %s2690_s7 = smov [#allocation16]   ;;  %s2691_s5 = smov [#allocation19]  }
  0xac   :  { %s125_s21 = sshll.u32 %s2690_s7, 4  ;;  %s149_s29 = sshll.u32 %s2691_s5, 4  ;;  %s126_s21 = int_to_ptr.vmem [resolvable:$true] %s125_s21  ;;  %s2935_s29 = int_to_ptr.vmem [resolvable:$true] %s149_s29 }
  0xad   :  { %s2548_s20 = scalar_lea.hbm %s3130_s8, 4096 }
  0xae   :  { %p2549_p10 = scmp.ne.s32.totalorder %s3130_s8, %s2548_s20  ;;  %p2552_p11 = scmp.lt.u32.totalorder %s2548_s20, %s3130_s8 }
  0xb0   :  { %p2554_p12 = pnand %p2552_p11, %p2549_p10 }
  0xb2   :  { %2557 = shalt.err (!%p2554_p12)
}
  0xb3   :  { %s2558_s6 = scalar_lea.vmem %s126_s21, 4096  ;;  %p2563_p0 = scmp.lt.s32.totalorder %s126_s21, %s126_s21 }
  0xb4   :  { %p2559_p13 = scmp.ne.s32.totalorder %s126_s21, %s2558_s6  ;;  %p2564_p1 = scmp.lt.s32.totalorder %s2558_s6, %s2558_s6 }
  0xb6   :  { %p2565_p2 = por %p2564_p1, %p2563_p0 }
  0xb8   :  { %p2566_p3 = pnand %p2565_p2, %p2559_p13 }
  0xba   :  { %2569 = shalt.err (!%p2566_p3)
}
  0xbb   :  { %131 = dma.hbm_to_vmem [thread:$0]  %s3130_s8, 4096, %s126_s21, [#allocation15], %s2679_s30, %s2679_s30, %s2680_s22  }
  0xbc   :  { %s2570_s9 = scalar_lea.hbm %s3132_s10, 2048 }
  0xbd   :  { %p2571_p4 = scmp.ne.s32.totalorder %s3132_s10, %s2570_s9  ;;  %p2574_p5 = scmp.lt.u32.totalorder %s2570_s9, %s3132_s10 }
  0xbf   :  { %p2576_p6 = pnand %p2574_p5, %p2571_p4 }
  0xc1   :  { %2579 = shalt.err (!%p2576_p6)
}
  0xc2   :  { %s2580_s25 = scalar_lea.vmem %s2935_s29, 2048  ;;  %p2585_p8 = scmp.lt.s32.totalorder %s2935_s29, %s2935_s29 }
  0xc3   :  { %p2581_p7 = scmp.ne.s32.totalorder %s2935_s29, %s2580_s25  ;;  %p2586_p9 = scmp.lt.s32.totalorder %s2580_s25, %s2580_s25 }
  0xc5   :  { %p2587_p10 = por %p2586_p9, %p2585_p8 }
  0xc7   :  { %p2588_p11 = pnand %p2587_p10, %p2581_p7 }
  0xc9   :  { %2591 = shalt.err (!%p2588_p11)
}
  0xca   :  { %155 = dma.hbm_to_vmem [thread:$0]  %s3132_s10, 2048, %s2935_s29, [#allocation18], %s2679_s30, %s2679_s30, %s2680_s22  }
  0xcb   :  { %s2692_s15 = smov [#allocation22]   ;;  %s2693_s21 = smov [#allocation23]  }
  0xcc   :  { %s173_s7 = sshll.u32 %s2692_s15, 4  ;;  %s185_s5 = sshll.u32 %s2693_s21, 4  ;;  %s174_s7 = int_to_ptr.vmem [resolvable:$true] %s173_s7  ;;  %s2972_s5 = int_to_ptr.vmem [resolvable:$true] %s185_s5 }
  0xcd   :  { %s2592_s20 = scalar_lea.hbm %s3134_s12, 2048 }
  0xce   :  { %p2593_p12 = scmp.ne.s32.totalorder %s3134_s12, %s2592_s20  ;;  %p2596_p13 = scmp.lt.u32.totalorder %s2592_s20, %s3134_s12 }
  0xd0   :  { %p2598_p0 = pnand %p2596_p13, %p2593_p12 }
  0xd2   :  { %2601 = shalt.err (!%p2598_p0)
}
  0xd3   :  { %s2602_s10 = scalar_lea.vmem %s174_s7, 2048  ;;  %p2607_p2 = scmp.lt.s32.totalorder %s174_s7, %s174_s7 }
  0xd4   :  { %p2603_p1 = scmp.ne.s32.totalorder %s174_s7, %s2602_s10  ;;  %p2608_p3 = scmp.lt.s32.totalorder %s2602_s10, %s2602_s10 }
  0xd6   :  { %p2609_p4 = por %p2608_p3, %p2607_p2 }
  0xd8   :  { %p2610_p5 = pnand %p2609_p4, %p2603_p1 }
  0xda   :  { %2613 = shalt.err (!%p2610_p5)
}
  0xdb   :  { %179 = dma.hbm_to_vmem [thread:$0]  %s3134_s12, 2048, %s174_s7, [#allocation21], %s2679_s30, %s2679_s30, %s2680_s22  }
  0xdc   :  { %s2614_s1 = scalar_lea.hbm %s3135_s13, 2048 }
  0xdd   :  { %p2615_p6 = scmp.ne.s32.totalorder %s3135_s13, %s2614_s1  ;;  %p2618_p7 = scmp.lt.u32.totalorder %s2614_s1, %s3135_s13 }
  0xdf   :  { %p2620_p8 = pnand %p2618_p7, %p2615_p6 }
  0xe1   :  { %2623 = shalt.err (!%p2620_p8)
}
  0xe2   :  { %s2624_s26 = scalar_lea.vmem %s2972_s5, 2048  ;;  %p2629_p10 = scmp.lt.s32.totalorder %s2972_s5, %s2972_s5 }
  0xe3   :  { %p2625_p9 = scmp.ne.s32.totalorder %s2972_s5, %s2624_s26  ;;  %p2630_p11 = scmp.lt.s32.totalorder %s2624_s26, %s2624_s26 }
  0xe5   :  { %p2631_p12 = por %p2630_p11, %p2629_p10 }
  0xe7   :  { %p2632_p13 = pnand %p2631_p12, %p2625_p9 }
  0xe9   :  { %2635 = shalt.err (!%p2632_p13)
}
  0xea   :  { %191 = dma.hbm_to_vmem [thread:$0]  %s3135_s13, 2048, %s2972_s5, [#allocation24], %s2679_s30, %s2679_s30, %s2680_s22  }
  0xeb   :  { %2658 = dma.done.wait [#allocation3], 128  }
  0xec   :  { %2659 = vsyncadd [#allocation3], 4294967168 }
  0xed   :  { %2660 = dma.done.wait [#allocation6], 2256  }
  0xee   :  { %2661 = vsyncadd [#allocation6], 4294965040 }
  0xef   :  { %2662 = dma.done.wait [#allocation9], 4096  }
  0xf0   :  { %2663 = vsyncadd [#allocation9], 4294963200 }
  0xf1   :  { %2664 = dma.done.wait [#allocation12], 4096  }
  0xf2   :  { %2665 = vsyncadd [#allocation12], 4294963200 }
  0xf3   :  { %2666 = dma.done.wait [#allocation15], 8192  }
  0xf4   :  { %2667 = vsyncadd [#allocation15], 4294959104 }
  0xf5   :  { %2668 = dma.done.wait [#allocation18], 4096  }
  0xf6   :  { %2669 = vsyncadd [#allocation18], 4294963200 }
  0xf7   :  { %2670 = dma.done.wait [#allocation21], 4096  }
  0xf8   :  { %2671 = vsyncadd [#allocation21], 4294963200 }
  0xf9   :  { %2672 = dma.done.wait [#allocation24], 2048  }
  0xfa   :  { %2673 = vsyncadd [#allocation24], 4294965248  ;;  %v2694_v0 = vmov 0.0|0.0   ;;  %vm2695_vm0 = vmmov 0   ;;  %v2696_v1 = vmov 0.0   ;;  %v235_v2 = vld [vmem:[#allocation7] sm:$0xff] }
  0xfb   :  { %2002 = vmatprep.subr.bf16.mxu0 %v2694_v0  ;;  %1684 = vmatprep.mubr.msk.f32.mxu0 %vm2695_vm0, %v2696_v1  ;;  %v236_v3 = vld [vmem:[#allocation7 + $0x8] sm:$0xff]  ;;  %v237_v4 = vld [vmem:[#allocation7 + $0x10] sm:$0xff]  ;;  %v238_v6 = vld [vmem:[#allocation7 + $0x18] sm:$0xff]  ;;  %s2697_s13 = smov [#allocation25]  }
  0xfc   :  { %2026 = vmatprep.subr.bf16.mxu1 %v2694_v0  ;;  %1719 = vmatprep.mubr.msk.f32.mxu1 %vm2695_vm0, %v2696_v1  ;;  %v2003_v5 = vpack.c.bf16 %v236_v3, %v235_v2  ;;  %v2006_v7 = vpack.c.bf16 %v238_v6, %v237_v4  ;;  %v239_v8 = vld [vmem:[#allocation7 + $0x20] sm:$0xff]  ;;  %v240_v9 = vld [vmem:[#allocation7 + $0x28] sm:$0xff]  ;;  %v332_v12 = vld [vmem:[#allocation8 + $0x10] sm:$0xff]  ;;  %s1420_s30 = sshll.u32 %s2697_s13, 4  ;;  %s1421_s30 = int_to_ptr.vmem [resolvable:$true] %s1420_s30 }
  0xfd   :  { %v330_v10 = vld [vmem:[#allocation8] sm:$0xff]  ;;  %v331_v11 = vld [vmem:[#allocation8 + $0x8] sm:$0xff]  ;;  %v333_v13 = vld [vmem:[#allocation8 + $0x18] sm:$0xff]  ;;  %v2009_v14 = vpack.c.bf16 %v240_v9, %v239_v8  ;;  %s2636_s22 = scalar_lea.vmem %s1421_s30, 128  ;;  %p2641_p1 = scmp.lt.s32.totalorder %s1421_s30, %s1421_s30 }
  0xfe   :  { %2004 = vmatpush3.bf16.msra.mxu0 %v2003_v5  ;;  %v2027_v15 = vpack.c.bf16 %v331_v11, %v330_v10  ;;  %v241_v16 = vld [vmem:[#allocation7 + $0x30] sm:$0xff]  ;;  %v242_v17 = vld [vmem:[#allocation7 + $0x38] sm:$0xff]  ;;  %v2030_v18 = vpack.c.bf16 %v333_v13, %v332_v12  ;;  %v334_v19 = vld [vmem:[#allocation8 + $0x20] sm:$0xff]  ;;  %p2637_p0 = scmp.ne.s32.totalorder %s1421_s30, %s2636_s22  ;;  %p2642_p2 = scmp.lt.s32.totalorder %s2636_s22, %s2636_s22 }
  0xff   :  { %2005 = vmatprep.subr.bf16.mxu0 %v2694_v0  ;;  %v335_v20 = vld [vmem:[#allocation8 + $0x28] sm:$0xff]  ;;  %v2012_v21 = vpack.c.bf16 %v242_v17, %v241_v16  ;;  %v243_v22 = vld [vmem:[#allocation7 + $0x40] sm:$0xff]  ;;  %v336_v25 = vld [vmem:[#allocation8 + $0x30] sm:$0xff] }
 0x100   :  { %2028 = vmatpush3.bf16.msra.mxu1 %v2027_v15  ;;  %v244_v23 = vld [vmem:[#allocation7 + $0x48] sm:$0xff]  ;;  %v2033_v24 = vpack.c.bf16 %v335_v20, %v334_v19  ;;  %v337_v26 = vld [vmem:[#allocation8 + $0x38] sm:$0xff]  ;;  %v245_v28 = vld [vmem:[#allocation7 + $0x50] sm:$0xff]  ;;  %p2643_p3 = por %p2642_p2, %p2641_p1 }
 0x101   :  { %2029 = vmatprep.subr.bf16.mxu1 %v2694_v0  ;;  %v2015_v27 = vpack.c.bf16 %v244_v23, %v243_v22  ;;  %v246_v29 = vld [vmem:[#allocation7 + $0x58] sm:$0xff]  ;;  %v2036_v30 = vpack.c.bf16 %v337_v26, %v336_v25  ;;  %v338_v31 = vld [vmem:[#allocation8 + $0x40] sm:$0xff]  ;;  %v339_v32 = vld [vmem:[#allocation8 + $0x48] sm:$0xff] }
 0x102   :  { %2007 = vmatpush3.bf16.msra.mxu0 %v2006_v7  ;;  %v2018_v33 = vpack.c.bf16 %v246_v29, %v245_v28  ;;  %v247_v34 = vld [vmem:[#allocation7 + $0x60] sm:$0xff]  ;;  %v248_v35 = vld [vmem:[#allocation7 + $0x68] sm:$0xff]  ;;  %v2039_v36 = vpack.c.bf16 %v339_v32, %v338_v31  ;;  %v340_v37 = vld [vmem:[#allocation8 + $0x50] sm:$0xff]  ;;  %p2644_p4 = pnand %p2643_p3, %p2637_p0 }
 0x103   :  { %2008 = vmatprep.subr.bf16.mxu0 %v2694_v0  ;;  %v341_v38 = vld [vmem:[#allocation8 + $0x58] sm:$0xff]  ;;  %v2021_v39 = vpack.c.bf16 %v248_v35, %v247_v34  ;;  %v249_v40 = vld [vmem:[#allocation7 + $0x70] sm:$0xff]  ;;  %v342_v45 = vld [vmem:[#allocation8 + $0x60] sm:$0xff] }
 0x104   :  { %2031 = vmatpush3.bf16.msra.mxu1 %v2030_v18  ;;  %v250_v41 = vld [vmem:[#allocation7 + $0x78] sm:$0xff]  ;;  %v2042_v42 = vpack.c.bf16 %v341_v38, %v340_v37  ;;  %v234_v44 = vld [vmem:[#allocation2] sm:$0xff]  ;;  %v425_v51 = vld [vmem:[#allocation10] sm:$0xff] }
 0x105   :  { %2032 = vmatprep.subr.bf16.mxu1 %v2694_v0  ;;  %v2024_v43 = vpack.c.bf16 %v250_v41, %v249_v40  ;;  %v343_v46 = vld [vmem:[#allocation8 + $0x68] sm:$0xff]  ;;  %v344_v48 = vld [vmem:[#allocation8 + $0x70] sm:$0xff]  ;;  %v345_v49 = vld [vmem:[#allocation8 + $0x78] sm:$0xff] }
 0x106   :  { %2010 = vmatpush3.bf16.msra.mxu0 %v2009_v14  ;;  %v2045_v47 = vpack.c.bf16 %v343_v46, %v342_v45  ;;  %v2048_v50 = vpack.c.bf16 %v345_v49, %v344_v48  ;;  %v426_v52 = vld [vmem:[#allocation10 + $0x8] sm:$0xff]  ;;  %v427_v53 = vld [vmem:[#allocation10 + $0x10] sm:$0xff]  ;;  %v428_v55 = vld [vmem:[#allocation10 + $0x18] sm:$0xff] }
 0x107   :  { %2011 = vmatprep.subr.bf16.mxu0 %v2694_v0  ;;  %v2051_v54 = vpack.c.bf16 %v426_v52, %v425_v51  ;;  %v2054_v56 = vpack.c.bf16 %v428_v55, %v427_v53  ;;  %v429_v57 = vld [vmem:[#allocation10 + $0x20] sm:$0xff]  ;;  %v430_v58 = vld [vmem:[#allocation10 + $0x28] sm:$0xff]  ;;  %v431_v60 = vld [vmem:[#allocation10 + $0x30] sm:$0xff] }
 0x108   :  { %2034 = vmatpush3.bf16.msra.mxu1 %v2033_v24  ;;  %v2057_v59 = vpack.c.bf16 %v430_v58, %v429_v57  ;;  %v432_v61 = vld [vmem:[#allocation10 + $0x38] sm:$0xff]  ;;  %v433_v63 = vld [vmem:[#allocation10 + $0x40] sm:$0xff]  ;;  %v434_v2 = vld [vmem:[#allocation10 + $0x48] sm:$0xff] }
 0x109   :  { %2035 = vmatprep.subr.bf16.mxu1 %v2694_v0  ;;  %v2060_v62 = vpack.c.bf16 %v432_v61, %v431_v60  ;;  %v2063_v3 = vpack.c.bf16 %v434_v2, %v433_v63  ;;  %v435_v4 = vld [vmem:[#allocation10 + $0x50] sm:$0xff]  ;;  %v436_v5 = vld [vmem:[#allocation10 + $0x58] sm:$0xff]  ;;  %v437_v13 = vld [vmem:[#allocation10 + $0x60] sm:$0xff] }
 0x10a   :  { %2013 = vmatpush3.bf16.msra.mxu0 %v2012_v21  ;;  %v2066_v6 = vpack.c.bf16 %v436_v5, %v435_v4  ;;  %v1436_v7 = vld [vmem:[#allocation5] ss:$0 sm:$0xff]  ;;  %v438_v14 = vld [vmem:[#allocation10 + $0x68] sm:$0xff]  ;;  %v440_v17 = vld [vmem:[#allocation10 + $0x78] sm:$0xff] }
 0x10b   :  { %2014 = vmatprep.subr.bf16.mxu0 %v2694_v0  ;;  %v2069_v15 = vpack.c.bf16 %v438_v14, %v437_v13  ;;  %v439_v16 = vld [vmem:[#allocation10 + $0x70] sm:$0xff]  ;;  %v520_v19 = vld [vmem:[#allocation11] sm:$0xff]  ;;  %v521_v20 = vld [vmem:[#allocation11 + $0x8] sm:$0xff] }
 0x10c   :  { %2037 = vmatpush3.bf16.msra.mxu1 %v2036_v30  ;;  %v2072_v18 = vpack.c.bf16 %v440_v17, %v439_v16  ;;  %v522_v21 = vld [vmem:[#allocation11 + $0x10] sm:$0xff]  ;;  %v2075_v22 = vpack.c.bf16 %v521_v20, %v520_v19  ;;  %v523_v23 = vld [vmem:[#allocation11 + $0x18] sm:$0xff]  ;;  %v524_v25 = vld [vmem:[#allocation11 + $0x20] sm:$0xff] }
 0x10d   :  { %2038 = vmatprep.subr.bf16.mxu1 %v2694_v0  ;;  %v2078_v24 = vpack.c.bf16 %v523_v23, %v522_v21  ;;  %v525_v26 = vld [vmem:[#allocation11 + $0x28] sm:$0xff]  ;;  %v526_v28 = vld [vmem:[#allocation11 + $0x30] sm:$0xff]  ;;  %v527_v29 = vld [vmem:[#allocation11 + $0x38] sm:$0xff] }
 0x10e   :  { %2016 = vmatpush3.bf16.msra.mxu0 %v2015_v27  ;;  %v2081_v27 = vpack.c.bf16 %v525_v26, %v524_v25  ;;  %v2084_v30 = vpack.c.bf16 %v527_v29, %v526_v28  ;;  %v528_v31 = vld [vmem:[#allocation11 + $0x40] sm:$0xff]  ;;  %v529_v32 = vld [vmem:[#allocation11 + $0x48] sm:$0xff]  ;;  %v530_v34 = vld [vmem:[#allocation11 + $0x50] sm:$0xff] }
 0x10f   :  { %2017 = vmatprep.subr.bf16.mxu0 %v2694_v0  ;;  %v531_v35 = vld [vmem:[#allocation11 + $0x58] sm:$0xff]  ;;  %v1437_v37 = vld [vmem:[#allocation5 + $0x1] ss:$0 sm:$0xff]  ;;  %v615_v49 = vld [vmem:[#allocation13] sm:$0xff] }
 0x110   :  { %2040 = vmatpush3.bf16.msra.mxu1 %v2039_v36  ;;  %v2090_v36 = vpack.c.bf16 %v531_v35, %v530_v34  ;;  %v534_v46 = vld [vmem:[#allocation11 + $0x70] sm:$0xff]  ;;  %v618_v53 = vld [vmem:[#allocation13 + $0x18] sm:$0xff]  ;;  %v619_v55 = vld [vmem:[#allocation13 + $0x20] sm:$0xff] }
 0x111   :  { %2041 = vmatprep.subr.bf16.mxu1 %v2694_v0  ;;  %v617_v51 = vld [vmem:[#allocation13 + $0x10] sm:$0xff]  ;;  %v623_v61 = vld [vmem:[#allocation13 + $0x40] sm:$0xff]  ;;  %v711_v17 = vld [vmem:[#allocation14 + $0x8] sm:$0xff] }
 0x112   :  { %2019 = vmatpush3.bf16.msra.mxu0 %v2018_v33  ;;  %v2087_v33 = vpack.c.bf16 %v529_v32, %v528_v31  ;;  %v621_v58 = vld [vmem:[#allocation13 + $0x30] sm:$0xff]  ;;  %v710_v19 = vld [vmem:[#allocation14] sm:$0xff]  ;;  %v717_v23 = vld [vmem:[#allocation14 + $0x38] sm:$0xff] }
 0x113   :  { %2020 = vmatprep.subr.bf16.mxu0 %v2694_v0  ;;  %v625_v2 = vld [vmem:[#allocation13 + $0x50] sm:$0xff]  ;;  %v714_v26 = vld [vmem:[#allocation14 + $0x20] sm:$0xff]  ;;  %v719_v28 = vld [vmem:[#allocation14 + $0x48] sm:$0xff] }
 0x114   :  { %2043 = vmatpush3.bf16.msra.mxu1 %v2042_v42  ;;  %v1438_v5 = vld [vmem:[#allocation5 + $0x2] ss:$0 sm:$0xff]  ;;  %v721_v29 = vld [vmem:[#allocation14 + $0x58] sm:$0xff]  ;;  %v718_v32 = vld [vmem:[#allocation14 + $0x40] sm:$0xff] }
 0x115   :  { %2044 = vmatprep.subr.bf16.mxu1 %v2694_v0  ;;  %v629_v14 = vld [vmem:[#allocation13 + $0x70] sm:$0xff]  ;;  %v2130_v31 = vpack.c.bf16 %v721_v29, %v719_v28  ;;  %v723_v34 = vld [vmem:[#allocation14 + $0x68] sm:$0xff]  ;;  %v725_v35 = vld [vmem:[#allocation14 + $0x78] sm:$0xff] }
 0x116   :  { %2022 = vmatpush3.bf16.msra.mxu0 %v2021_v39  ;;  %v712_v21 = vld [vmem:[#allocation14 + $0x10] sm:$0xff] }
 0x117   :  { %2023 = vmatprep.subr.bf16.mxu0 %v2694_v0 }
 0x118   :  { %2046 = vmatpush3.bf16.msra.mxu1 %v2045_v47  ;;  %v535_v47 = vld [vmem:[#allocation11 + $0x78] sm:$0xff] }
 0x119   :  { %2047 = vmatprep.subr.bf16.mxu1 %v2694_v0  ;;  %v2096_v48 = vpack.c.bf16 %v535_v47, %v534_v46  ;;  %v731_v46 = vld [vmem:[#allocation14 + $0xa8] sm:$0xff]  ;;  %v733_v47 = vld [vmem:[#allocation14 + $0xb8] sm:$0xff] }
 0x11a   :  { %2025 = vmatpush3.bf16.msra.mxu0 %v2024_v43  ;;  %v532_v43 = vld [vmem:[#allocation11 + $0x60] sm:$0xff] }
 0x11b   :  { %2050 = vmatprep.subr.bf16.mxu0 %v2694_v0 }
 0x11c   :  { %2049 = vmatpush3.bf16.msra.mxu1 %v2048_v50  ;;  %v616_v50 = vld [vmem:[#allocation13 + $0x8] sm:$0xff] }
 0x11d   :  { %1685 = vmatmul.mubr.f32.vlgmr.msra.gmra.mrb[0].mxu0 %v234_v44  ;;  %2074 = vmatprep.subr.bf16.mxu1 %v2694_v0  ;;  %v533_v44 = vld [vmem:[#allocation11 + $0x68] sm:$0xff]  ;;  %v2099_v52 = vpack.c.bf16 %v616_v50, %v615_v49  ;;  %v2142_v49 = vpack.c.bf16 %v733_v47, %v731_v46  ;;  %v730_v50 = vld [vmem:[#allocation14 + $0xa0] sm:$0xff] }
 0x11e   :  { %1754 = vmatprep.mubr.msk.f32.mxu0 %vm2695_vm0, %v2696_v1  ;;  %2052 = vmatpush3.bf16.msra.mxu0 %v2051_v54  ;;  %v2093_v45 = vpack.c.bf16 %v533_v44, %v532_v43  ;;  %v2102_v54 = vpack.c.bf16 %v618_v53, %v617_v51  ;;  %v726_v44 = vld [vmem:[#allocation14 + $0x80] sm:$0xff]  ;;  %v732_v51 = vld [vmem:[#allocation14 + $0xb0] sm:$0xff]  ;;  %v737_v53 = vld [vmem:[#allocation14 + $0xd8] sm:$0xff] }
 0x11f   :  { %2053 = vmatprep.subr.bf16.mxu0 %v2694_v0 }
 0x122   :  { %2055 = vmatpush3.bf16.msra.mxu0 %v2054_v56  ;;  %v620_v56 = vld [vmem:[#allocation13 + $0x28] sm:$0xff] }
 0x123   :  { %2056 = vmatprep.subr.bf16.mxu0 %v2694_v0  ;;  %v2105_v57 = vpack.c.bf16 %v620_v56, %v619_v55  ;;  %v1439_v56 = vld [vmem:[#allocation5 + $0x3] ss:$0 sm:$0xff] }
 0x126   :  { %2058 = vmatpush3.bf16.msra.mxu0 %v2057_v59  ;;  %v622_v59 = vld [vmem:[#allocation13 + $0x38] sm:$0xff] }
 0x127   :  { %2059 = vmatprep.subr.bf16.mxu0 %v2694_v0  ;;  %v2108_v60 = vpack.c.bf16 %v622_v59, %v621_v58 }
 0x12a   :  { %2061 = vmatpush3.bf16.msra.mxu0 %v2060_v62  ;;  %v624_v62 = vld [vmem:[#allocation13 + $0x48] sm:$0xff] }
 0x12b   :  { %2062 = vmatprep.subr.bf16.mxu0 %v2694_v0  ;;  %v2111_v63 = vpack.c.bf16 %v624_v62, %v623_v61  ;;  %v734_v62 = vld [vmem:[#allocation14 + $0xc0] sm:$0xff] }
 0x12e   :  { %2064 = vmatpush3.bf16.msra.mxu0 %v2063_v3  ;;  %v626_v3 = vld [vmem:[#allocation13 + $0x58] sm:$0xff] }
 0x12f   :  { %2065 = vmatprep.subr.bf16.mxu0 %v2694_v0  ;;  %v2114_v4 = vpack.c.bf16 %v626_v3, %v625_v2  ;;  %v739_v3 = vld [vmem:[#allocation14 + $0xe8] sm:$0xff] }
 0x132   :  { %2067 = vmatpush3.bf16.msra.mxu0 %v2066_v6 }
 0x133   :  { %2068 = vmatprep.subr.bf16.mxu0 %v2694_v0 }
 0x136   :  { %2070 = vmatpush3.bf16.msra.mxu0 %v2069_v15  ;;  %v630_v15 = vld [vmem:[#allocation13 + $0x78] sm:$0xff] }
 0x137   :  { %2071 = vmatprep.subr.bf16.mxu0 %v2694_v0  ;;  %v2120_v16 = vpack.c.bf16 %v630_v15, %v629_v14  ;;  %v847_v14 = vld [vmem:[#allocation16 + $0x90] sm:$0xff]  ;;  %v848_v15 = vld [vmem:[#allocation16 + $0x98] sm:$0xff] }
 0x13a   :  { %2073 = vmatpush3.bf16.msra.mxu0 %v2072_v18  ;;  %v713_v18 = vld [vmem:[#allocation14 + $0x18] sm:$0xff] }
 0x13b   :  { %2098 = vmatprep.subr.bf16.mxu0 %v2694_v0  ;;  %v2122_v20 = vpack.c.bf16 %v713_v18, %v711_v17  ;;  %v2158_v17 = vpack.c.bf16 %v848_v15, %v847_v14  ;;  %v831_v18 = vld [vmem:[#allocation16 + $0x10] sm:$0xff]  ;;  %v949_v14 = vld [vmem:[#allocation17 + $0x48] sm:$0xff] }
 0x1f0   :  { %v324_v8 = vpop.f32.mrb[0].mxu0 }
 0x1f1   :  { %v325_v9 = vadd.f32 %v1436_v7, %v324_v8  ;;  %v1686_v10 = vpop.f32.mrb[1].mxu0 }
 0x1f3   :  { %v328_v11 = vmul.f32 0.01, %v325_v9 }
 0x1f5   :  { %v329_v12 = vmax.f32 %v325_v9, %v328_v11  ;;  %v627_v11 = vld [vmem:[#allocation13 + $0x60] sm:$0xff] }
 0x1f7   :  { %1720 = vmatmul.mubr.f32.vlgmr.msra.gmra.mrb[0].mxu1 %v329_v12  ;;  %v628_v12 = vld [vmem:[#allocation13 + $0x68] sm:$0xff] }
 0x1f8   :  { %1789 = vmatprep.mubr.msk.f32.mxu1 %vm2695_vm0, %v2696_v1  ;;  %2076 = vmatpush3.bf16.msra.mxu1 %v2075_v22  ;;  %v2117_v13 = vpack.c.bf16 %v628_v12, %v627_v11  ;;  %v715_v22 = vld [vmem:[#allocation14 + $0x28] sm:$0xff]  ;;  %v829_v11 = vld [vmem:[#allocation16] sm:$0xff] }
 0x1f9   :  { %2077 = vmatprep.subr.bf16.mxu1 %v2694_v0  ;;  %v2126_v25 = vpack.c.bf16 %v717_v23, %v715_v22 }
 0x1fc   :  { %2079 = vmatpush3.bf16.msra.mxu1 %v2078_v24  ;;  %v2124_v24 = vpack.c.bf16 %v712_v21, %v710_v19  ;;  %v832_v19 = vld [vmem:[#allocation16 + $0x18] sm:$0xff]  ;;  %v850_v21 = vld [vmem:[#allocation16 + $0xa8] sm:$0xff] }
 0x1fd   :  { %2080 = vmatprep.subr.bf16.mxu1 %v2694_v0  ;;  %v2160_v22 = vpack.c.bf16 %v832_v19, %v831_v18  ;;  %v744_v19 = vlaneseq }
 0x200   :  { %2082 = vmatpush3.bf16.msra.mxu1 %v2081_v27  ;;  %v716_v27 = vld [vmem:[#allocation14 + $0x30] sm:$0xff] }
 0x201   :  { %2083 = vmatprep.subr.bf16.mxu1 %v2694_v0 }
 0x204   :  { %2085 = vmatpush3.bf16.msra.mxu1 %v2084_v30  ;;  %v2128_v30 = vpack.c.bf16 %v716_v27, %v714_v26  ;;  %v851_v26 = vld [vmem:[#allocation16 + $0xb0] sm:$0xff]  ;;  %v852_v27 = vld [vmem:[#allocation16 + $0xb8] sm:$0xff] }
 0x205   :  { %2086 = vmatprep.subr.bf16.mxu1 %v2694_v0  ;;  %v2166_v29 = vpack.c.bf16 %v852_v27, %v851_v26 }
 0x208   :  { %2088 = vmatpush3.bf16.msra.mxu1 %v2087_v33  ;;  %v720_v33 = vld [vmem:[#allocation14 + $0x50] sm:$0xff] }
 0x209   :  { %2089 = vmatprep.subr.bf16.mxu1 %v2694_v0 }
 0x20c   :  { %2091 = vmatpush3.bf16.msra.mxu1 %v2090_v36  ;;  %v2132_v36 = vpack.c.bf16 %v720_v33, %v718_v32  ;;  %v853_v32 = vld [vmem:[#allocation16 + $0xc0] sm:$0xff]  ;;  %v854_v33 = vld [vmem:[#allocation16 + $0xc8] sm:$0xff] }
 0x20d   :  { %2092 = vmatprep.subr.bf16.mxu1 %v2694_v0 }
 0x210   :  { %2094 = vmatpush3.bf16.msra.mxu1 %v2093_v45  ;;  %v728_v45 = vld [vmem:[#allocation14 + $0x90] sm:$0xff] }
 0x211   :  { %2095 = vmatprep.subr.bf16.mxu1 %v2694_v0 }
 0x214   :  { %2097 = vmatpush3.bf16.msra.mxu1 %v2096_v48  ;;  %v2140_v48 = vpack.c.bf16 %v728_v45, %v726_v44  ;;  %v1440_v45 = vld [vmem:[#allocation5 + $0x4] ss:$0 sm:$0xff] }
 0x215   :  { %2123 = vmatprep.subr.bf16.mxu1 %v2122_v20  ;;  %v849_v20 = vld [vmem:[#allocation16 + $0xa0] sm:$0xff] }
 0x216   :  { %v2162_v23 = vpack.c.bf16 %v850_v21, %v849_v20  ;;  %v745_v20 = vshrl.u32 %v744_v19, 7  ;;  %v1137_v19 = vld [vmem:[#allocation20 + $0x38] sm:$0xff] }
 0x218   :  { %v746_v21 = vsub.s32 0, %v745_v20 }
 0x2ca   :  { %v419_v38 = vpop.f32.mrb[0].mxu1 }
 0x2cb   :  { %v420_v39 = vadd.f32 %v1437_v37, %v419_v38  ;;  %v1721_v40 = vpop.f32.mrb[1].mxu1  ;;  %v2134_v37 = vpack.c.bf16 %v725_v35, %v723_v34  ;;  %v722_v38 = vld [vmem:[#allocation14 + $0x60] sm:$0xff]  ;;  %v2170_v35 = vpack.c.bf16 %v854_v33, %v853_v32 }
 0x2cc   :  { %v727_v40 = vld [vmem:[#allocation14 + $0x88] sm:$0xff] }
 0x2cd   :  { %v423_v41 = vmul.f32 0.01, %v420_v39 }
 0x2cf   :  { %v424_v42 = vmax.f32 %v420_v39, %v423_v41  ;;  %v724_v39 = vld [vmem:[#allocation14 + $0x70] sm:$0xff]  ;;  %v729_v41 = vld [vmem:[#allocation14 + $0x98] sm:$0xff] }
 0x2d0   :  { %v2138_v43 = vpack.c.bf16 %v729_v41, %v727_v40 }
 0x2d1   :  { %1755 = vmatmul.mubr.f32.vlgmr.msra.gmra.mrb[2].mxu0 %v424_v42  ;;  %v2136_v42 = vpack.c.bf16 %v724_v39, %v722_v38  ;;  %v855_v38 = vld [vmem:[#allocation16 + $0xd0] sm:$0xff]  ;;  %v856_v39 = vld [vmem:[#allocation16 + $0xd8] sm:$0xff] }
 0x2d2   :  { %1824 = vmatprep.mubr.msk.f32.mxu0 %vm2695_vm0, %v2696_v1  ;;  %2100 = vmatpush3.bf16.msra.mxu0 %v2099_v52  ;;  %v735_v52 = vld [vmem:[#allocation14 + $0xc8] sm:$0xff]  ;;  %v2174_v41 = vpack.c.bf16 %v856_v39, %v855_v38  ;;  %v955_v38 = vld [vmem:[#allocation17 + $0x78] sm:$0xff] }
 0x2d3   :  { %2101 = vmatprep.subr.bf16.mxu0 %v2694_v0  ;;  %v2146_v55 = vpack.c.bf16 %v737_v53, %v735_v52  ;;  %v858_v52 = vld [vmem:[#allocation16 + $0xe8] sm:$0xff] }
 0x2d6   :  { %2103 = vmatpush3.bf16.msra.mxu0 %v2102_v54  ;;  %v2144_v54 = vpack.c.bf16 %v732_v51, %v730_v50  ;;  %v857_v51 = vld [vmem:[#allocation16 + $0xe0] sm:$0xff] }
 0x2d7   :  { %2104 = vmatprep.subr.bf16.mxu0 %v2694_v0  ;;  %v2178_v53 = vpack.c.bf16 %v858_v52, %v857_v51  ;;  %v1043_v52 = vld [vmem:[#allocation19 + $0x40] sm:$0xff] }
 0x2da   :  { %2106 = vmatpush3.bf16.msra.mxu0 %v2105_v57 }
 0x2db   :  { %2107 = vmatprep.subr.bf16.mxu0 %v2694_v0 }
 0x2de   :  { %2109 = vmatpush3.bf16.msra.mxu0 %v2108_v60 }
 0x2df   :  { %2110 = vmatprep.subr.bf16.mxu0 %v2694_v0 }
 0x2e2   :  { %2112 = vmatpush3.bf16.msra.mxu0 %v2111_v63  ;;  %v736_v63 = vld [vmem:[#allocation14 + $0xd0] sm:$0xff] }
 0x2e3   :  { %2113 = vmatprep.subr.bf16.mxu0 %v2694_v0  ;;  %v2148_v2 = vpack.c.bf16 %v736_v63, %v734_v62  ;;  %v940_v63 = vld [vmem:[#allocation17] sm:$0xff] }
 0x2e6   :  { %2115 = vmatpush3.bf16.msra.mxu0 %v2114_v4  ;;  %v741_v4 = vld [vmem:[#allocation14 + $0xf8] sm:$0xff] }
 0x2e7   :  { %2116 = vmatprep.subr.bf16.mxu0 %v2694_v0 }
 0x2ea   :  { %2118 = vmatpush3.bf16.msra.mxu0 %v2117_v13  ;;  %v830_v13 = vld [vmem:[#allocation16 + $0x8] sm:$0xff] }
 0x2eb   :  { %2119 = vmatprep.subr.bf16.mxu0 %v2694_v0 }
 0x2ee   :  { %2121 = vmatpush3.bf16.msra.mxu0 %v2120_v16  ;;  %v2156_v16 = vpack.c.bf16 %v830_v13, %v829_v11  ;;  %v947_v11 = vld [vmem:[#allocation17 + $0x38] sm:$0xff]  ;;  %v948_v13 = vld [vmem:[#allocation17 + $0x40] sm:$0xff] }
 0x2ef   :  { %v2199_v15 = vpack.c.bf16 %v949_v14, %v948_v13  ;;  %v1133_v13 = vld [vmem:[#allocation20 + $0x18] sm:$0xff] }
 0x3a4   :  { %v514_v6 = vpop.f32.mrb[2].mxu0 }
 0x3a5   :  { %v515_v7 = vadd.f32 %v1438_v5, %v514_v6  ;;  %v1756_v8 = vpop.f32.mrb[3].mxu0  ;;  %v2150_v5 = vpack.c.bf16 %v741_v4, %v739_v3  ;;  %v738_v6 = vld [vmem:[#allocation14 + $0xe0] sm:$0xff]  ;;  %v942_v3 = vld [vmem:[#allocation17 + $0x10] sm:$0xff] }
 0x3a7   :  { %v518_v9 = vmul.f32 0.01, %v515_v7 }
 0x3a9   :  { %v519_v10 = vmax.f32 %v515_v7, %v518_v9  ;;  %v740_v7 = vld [vmem:[#allocation14 + $0xf0] sm:$0xff]  ;;  %v845_v9 = vld [vmem:[#allocation16 + $0x80] sm:$0xff] }
 0x3aa   :  { %v2152_v8 = vpack.c.bf16 %v740_v7, %v738_v6  ;;  %v944_v7 = vld [vmem:[#allocation17 + $0x20] sm:$0xff] }
 0x3ab   :  { %1790 = vmatmul.mubr.f32.vlgmr.msra.gmra.mrb[2].mxu1 %v519_v10  ;;  %v846_v10 = vld [vmem:[#allocation16 + $0x88] sm:$0xff] }
 0x3ac   :  { %818 = vmatprep.mubr.f32.mxu1 %v2696_v1  ;;  %2125 = vmatpush1.bf16.msra.mxu1 %v2124_v24  ;;  %v2154_v12 = vpack.c.bf16 %v846_v10, %v845_v9  ;;  %v833_v24 = vld [vmem:[#allocation16 + $0x20] sm:$0xff]  ;;  %v946_v10 = vld [vmem:[#allocation17 + $0x30] sm:$0xff] }
 0x3ad   :  { %2127 = vmatprep.subr.bf16.mxu1 %v2126_v25  ;;  %v834_v25 = vld [vmem:[#allocation16 + $0x28] sm:$0xff] }
 0x3ae   :  { %2155 = vmatprep.subr.bf16.mxu0 %v2154_v12  ;;  %v2164_v28 = vpack.c.bf16 %v834_v25, %v833_v24  ;;  %v2196_v12 = vpack.c.bf16 %v947_v11, %v946_v10  ;;  %v1131_v10 = vld [vmem:[#allocation20 + $0x8] sm:$0xff]  ;;  %v1132_v11 = vld [vmem:[#allocation20 + $0x10] sm:$0xff] }
 0x3af   :  { %v2238_v14 = vpack.c.bf16 %v1133_v13, %v1132_v11  ;;  %v1323_v11 = vld [vmem:[#allocation23 + $0x18] sm:$0xff]  ;;  %v1325_v13 = vld [vmem:[#allocation23 + $0x28] sm:$0xff] }
 0x3b0   :  { %2129 = vmatpush1.bf16.msra.mxu1 %v2128_v30  ;;  %v835_v30 = vld [vmem:[#allocation16 + $0x30] sm:$0xff] }
 0x3b1   :  { %2131 = vmatprep.subr.bf16.mxu1 %v2130_v31  ;;  %v836_v31 = vld [vmem:[#allocation16 + $0x38] sm:$0xff] }
 0x3b2   :  { %v2168_v34 = vpack.c.bf16 %v836_v31, %v835_v30 }
 0x3b4   :  { %2133 = vmatpush1.bf16.msra.mxu1 %v2132_v36  ;;  %v837_v36 = vld [vmem:[#allocation16 + $0x40] sm:$0xff] }
 0x3b5   :  { %2135 = vmatprep.subr.bf16.mxu1 %v2134_v37  ;;  %v838_v37 = vld [vmem:[#allocation16 + $0x48] sm:$0xff] }
 0x3b6   :  { %v2172_v40 = vpack.c.bf16 %v838_v37, %v837_v36  ;;  %v954_v37 = vld [vmem:[#allocation17 + $0x70] sm:$0xff] }
 0x3b7   :  { %v2208_v39 = vpack.c.bf16 %v955_v38, %v954_v37  ;;  %v1145_v37 = vld [vmem:[#allocation20 + $0x78] sm:$0xff] }
 0x3b8   :  { %2137 = vmatpush1.bf16.msra.mxu1 %v2136_v42  ;;  %v839_v42 = vld [vmem:[#allocation16 + $0x50] sm:$0xff] }
 0x3b9   :  { %2139 = vmatprep.subr.bf16.mxu1 %v2138_v43  ;;  %v840_v43 = vld [vmem:[#allocation16 + $0x58] sm:$0xff] }
 0x3ba   :  { %v2176_v44 = vpack.c.bf16 %v840_v43, %v839_v42  ;;  %v1037_v42 = vld [vmem:[#allocation19 + $0x10] sm:$0xff] }
 0x3bc   :  { %2141 = vmatpush1.bf16.msra.mxu1 %v2140_v48 }
 0x3bd   :  { %2143 = vmatprep.subr.bf16.mxu1 %v2142_v49 }
 0x3c0   :  { %2145 = vmatpush1.bf16.msra.mxu1 %v2144_v54  ;;  %v841_v54 = vld [vmem:[#allocation16 + $0x60] sm:$0xff] }
 0x3c1   :  { %2147 = vmatprep.subr.bf16.mxu1 %v2146_v55  ;;  %v842_v55 = vld [vmem:[#allocation16 + $0x68] sm:$0xff] }
 0x3c4   :  { %2149 = vmatpush1.bf16.msra.mxu1 %v2148_v2  ;;  %v941_v2 = vld [vmem:[#allocation17 + $0x8] sm:$0xff] }
 0x3c5   :  { %2151 = vmatprep.subr.bf16.mxu1 %v2150_v5  ;;  %v2187_v4 = vpack.c.bf16 %v941_v2, %v940_v63  ;;  %v943_v5 = vld [vmem:[#allocation17 + $0x18] sm:$0xff] }
 0x3c6   :  { %v2190_v6 = vpack.c.bf16 %v943_v5, %v942_v3  ;;  %v1047_v3 = vld [vmem:[#allocation19 + $0x60] sm:$0xff] }
 0x3c8   :  { %2153 = vmatpush1.bf16.msra.mxu1 %v2152_v8  ;;  %v945_v8 = vld [vmem:[#allocation17 + $0x28] sm:$0xff] }
 0x3c9   :  { %2186 = vmatprep.subr.bf16.mxu1 %v2694_v0  ;;  %v2193_v9 = vpack.c.bf16 %v945_v8, %v944_v7  ;;  %v1050_v7 = vld [vmem:[#allocation19 + $0x78] sm:$0xff] }
 0x47e   :  { %v609_v57 = vpop.f32.mrb[2].mxu1 }
 0x47f   :  { %v610_v58 = vadd.f32 %v1439_v56, %v609_v57  ;;  %v1791_v59 = vpop.f32.mrb[3].mxu1  ;;  %v2180_v56 = vpack.c.bf16 %v842_v55, %v841_v54  ;;  %v859_v57 = vld [vmem:[#allocation16 + $0xf0] sm:$0xff] }
 0x480   :  { %v1045_v55 = vld [vmem:[#allocation19 + $0x50] sm:$0xff] }
 0x481   :  { %v613_v60 = vmul.f32 0.01, %v610_v58 }
 0x483   :  { %v614_v61 = vmax.f32 %v610_v58, %v613_v60  ;;  %v860_v58 = vld [vmem:[#allocation16 + $0xf8] sm:$0xff]  ;;  %v843_v60 = vld [vmem:[#allocation16 + $0x70] sm:$0xff] }
 0x484   :  { %v2182_v59 = vpack.c.bf16 %v860_v58, %v859_v57 }
 0x485   :  { %1825 = vmatmul.mubr.f32.vlgmr.msra.gmra.mrb[4].mxu0 %v614_v61  ;;  %v844_v61 = vld [vmem:[#allocation16 + $0x78] sm:$0xff] }
 0x486   :  { %2157 = vmatpush3.bf16.msra.mxu0 %v2156_v16  ;;  %v2184_v62 = vpack.c.bf16 %v844_v61, %v843_v60  ;;  %v950_v16 = vld [vmem:[#allocation17 + $0x50] sm:$0xff] }
 0x487   :  { %2159 = vmatprep.subr.bf16.mxu0 %v2158_v17  ;;  %v951_v17 = vld [vmem:[#allocation17 + $0x58] sm:$0xff] }
 0x488   :  { %v2202_v18 = vpack.c.bf16 %v951_v17, %v950_v16  ;;  %v1135_v16 = vld [vmem:[#allocation20 + $0x28] sm:$0xff] }
 0x48a   :  { %2161 = vmatpush3.bf16.msra.mxu0 %v2160_v22  ;;  %v742_v22 = vld [vmem:[#allocation5 + $0x5] sm:$0x3] }
 0x48b   :  { %2163 = vmatprep.subr.bf16.mxu0 %v2162_v23  ;;  %v750_v23 = vsub.s32 1, %v745_v20  ;;  %v747_v24 = vrot.slane %v742_v22, %v746_v21  ;;  %v1138_v21 = vld [vmem:[#allocation20 + $0x40] sm:$0xff] }
 0x48d   :  { %v751_v25 = vrot.slane %v742_v22, %v750_v23  ;;  %v1139_v22 = vld [vmem:[#allocation20 + $0x48] sm:$0xff] }
 0x48e   :  { %2165 = vmatpush3.bf16.msra.mxu0 %v2164_v28  ;;  %v2247_v23 = vpack.c.bf16 %v1139_v22, %v1138_v21  ;;  %v1330_v21 = vld [vmem:[#allocation23 + $0x50] sm:$0xff]  ;;  %v1331_v22 = vld [vmem:[#allocation23 + $0x58] sm:$0xff] }
 0x48f   :  { %2167 = vmatprep.subr.bf16.mxu0 %v2166_v29 }
 0x492   :  { %2169 = vmatpush3.bf16.msra.mxu0 %v2168_v34  ;;  %v952_v34 = vld [vmem:[#allocation17 + $0x60] sm:$0xff] }
 0x493   :  { %2171 = vmatprep.subr.bf16.mxu0 %v2170_v35  ;;  %v953_v35 = vld [vmem:[#allocation17 + $0x68] sm:$0xff] }
 0x494   :  { %v2205_v36 = vpack.c.bf16 %v953_v35, %v952_v34  ;;  %v1143_v34 = vld [vmem:[#allocation20 + $0x68] sm:$0xff] }
 0x496   :  { %2173 = vmatpush3.bf16.msra.mxu0 %v2172_v40  ;;  %v1035_v40 = vld [vmem:[#allocation19] sm:$0xff] }
 0x497   :  { %2175 = vmatprep.subr.bf16.mxu0 %v2174_v41  ;;  %v1036_v41 = vld [vmem:[#allocation19 + $0x8] sm:$0xff] }
 0x498   :  { %v2211_v43 = vpack.c.bf16 %v1036_v41, %v1035_v40  ;;  %v1226_v40 = vld [vmem:[#allocation22 + $0x8] sm:$0xff]  ;;  %v1227_v41 = vld [vmem:[#allocation22 + $0x10] sm:$0xff] }
 0x49a   :  { %2177 = vmatpush3.bf16.msra.mxu0 %v2176_v44  ;;  %v1038_v44 = vld [vmem:[#allocation19 + $0x18] sm:$0xff] }
 0x49b   :  { %2179 = vmatprep.subr.bf16.mxu0 %v2178_v53  ;;  %v1044_v53 = vld [vmem:[#allocation19 + $0x48] sm:$0xff] }
 0x49c   :  { %v2223_v54 = vpack.c.bf16 %v1044_v53, %v1043_v52  ;;  %v1234_v52 = vld [vmem:[#allocation22 + $0x48] sm:$0xff] }
 0x49e   :  { %2181 = vmatpush3.bf16.msra.mxu0 %v2180_v56  ;;  %v1046_v56 = vld [vmem:[#allocation19 + $0x58] sm:$0xff] }
 0x49f   :  { %2183 = vmatprep.subr.bf16.mxu0 %v2182_v59  ;;  %v2226_v57 = vpack.c.bf16 %v1046_v56, %v1045_v55  ;;  %v1441_v59 = vld [vmem:[#allocation5 + $0x7] ss:$0 sm:$0xff] }
 0x4a0   :  { %v1236_v55 = vld [vmem:[#allocation22 + $0x58] sm:$0xff] }
 0x4a2   :  { %2185 = vmatpush3.bf16.msra.mxu0 %v2184_v62 }
 0x4a3   :  { %2210 = vmatprep.subr.bf16.mxu0 %v2694_v0 }
 0x558   :  { %v704_v46 = vpop.f32.mrb[4].mxu0 }
 0x559   :  { %v705_v47 = vadd.f32 %v1440_v45, %v704_v46  ;;  %v1826_v48 = vpop.f32.mrb[5].mxu0  ;;  %v2214_v45 = vpack.c.bf16 %v1038_v44, %v1037_v42  ;;  %v1039_v46 = vld [vmem:[#allocation19 + $0x20] sm:$0xff] }
 0x55b   :  { %v708_v49 = vmul.f32 0.01, %v705_v47 }
 0x55d   :  { %v709_v50 = vmax.f32 %v705_v47, %v708_v49  ;;  %v1040_v47 = vld [vmem:[#allocation19 + $0x28] sm:$0xff]  ;;  %v1041_v49 = vld [vmem:[#allocation19 + $0x30] sm:$0xff] }
 0x55e   :  { %v2217_v48 = vpack.c.bf16 %v1040_v47, %v1039_v46  ;;  %v1230_v46 = vld [vmem:[#allocation22 + $0x28] sm:$0xff] }
 0x55f   :  { %819 = vmatmul.mubr.f32.vlgmr.msra.gmra.mrb[4].mxu1 %v709_v50  ;;  %v1042_v50 = vld [vmem:[#allocation19 + $0x38] sm:$0xff] }
 0x560   :  { %1859 = vmatprep.mubr.msk.f32.mxu1 %vm2695_vm0, %v2696_v1  ;;  %2188 = vmatpush3.bf16.msra.mxu1 %v2187_v4  ;;  %v2220_v51 = vpack.c.bf16 %v1042_v50, %v1041_v49  ;;  %v1048_v4 = vld [vmem:[#allocation19 + $0x68] sm:$0xff]  ;;  %v1232_v49 = vld [vmem:[#allocation22 + $0x38] sm:$0xff] }
 0x561   :  { %2189 = vmatprep.subr.bf16.mxu1 %v2694_v0  ;;  %v2229_v5 = vpack.c.bf16 %v1048_v4, %v1047_v3  ;;  %v1239_v4 = vld [vmem:[#allocation22 + $0x70] sm:$0xff] }
 0x564   :  { %2191 = vmatpush3.bf16.msra.mxu1 %v2190_v6  ;;  %v1049_v6 = vld [vmem:[#allocation19 + $0x70] sm:$0xff] }
 0x565   :  { %2192 = vmatprep.subr.bf16.mxu1 %v2694_v0  ;;  %v2232_v8 = vpack.c.bf16 %v1050_v7, %v1049_v6  ;;  %v1320_v7 = vld [vmem:[#allocation23] sm:$0xff] }
 0x568   :  { %2194 = vmatpush3.bf16.msra.mxu1 %v2193_v9  ;;  %v1130_v9 = vld [vmem:[#allocation20] sm:$0xff] }
 0x569   :  { %2195 = vmatprep.subr.bf16.mxu1 %v2694_v0 }
 0x56c   :  { %2197 = vmatpush3.bf16.msra.mxu1 %v2196_v12  ;;  %v2235_v12 = vpack.c.bf16 %v1131_v10, %v1130_v9  ;;  %v1322_v9 = vld [vmem:[#allocation23 + $0x10] sm:$0xff] }
 0x56d   :  { %2198 = vmatprep.subr.bf16.mxu1 %v2694_v0 }
 0x570   :  { %2200 = vmatpush3.bf16.msra.mxu1 %v2199_v15  ;;  %v1134_v15 = vld [vmem:[#allocation20 + $0x20] sm:$0xff] }
 0x571   :  { %2201 = vmatprep.subr.bf16.mxu1 %v2694_v0  ;;  %v2241_v17 = vpack.c.bf16 %v1135_v16, %v1134_v15  ;;  %v1326_v15 = vld [vmem:[#allocation23 + $0x30] sm:$0xff]  ;;  %v1327_v16 = vld [vmem:[#allocation23 + $0x38] sm:$0xff] }
 0x574   :  { %2203 = vmatpush3.bf16.msra.mxu1 %v2202_v18  ;;  %v1136_v18 = vld [vmem:[#allocation20 + $0x30] sm:$0xff] }
 0x575   :  { %2204 = vmatprep.subr.bf16.mxu1 %v2694_v0  ;;  %v2244_v20 = vpack.c.bf16 %v1137_v19, %v1136_v18  ;;  %v1328_v18 = vld [vmem:[#allocation23 + $0x40] sm:$0xff]  ;;  %v1329_v19 = vld [vmem:[#allocation23 + $0x48] sm:$0xff] }
 0x578   :  { %2206 = vmatpush3.bf16.msra.mxu1 %v2205_v36  ;;  %v1144_v36 = vld [vmem:[#allocation20 + $0x70] sm:$0xff] }
 0x579   :  { %2207 = vmatprep.subr.bf16.mxu1 %v2694_v0  ;;  %v2256_v38 = vpack.c.bf16 %v1145_v37, %v1144_v36  ;;  %v1445_v36 = vld [vmem:[#allocation5 + $0xb] ss:$0 sm:$0xff] }
 0x57c   :  { %2209 = vmatpush3.bf16.msra.mxu1 %v2208_v39  ;;  %v1225_v39 = vld [vmem:[#allocation22] sm:$0xff] }
 0x57d   :  { %2234 = vmatprep.subr.bf16.mxu1 %v2694_v0  ;;  %v2259_v42 = vpack.c.bf16 %v1226_v40, %v1225_v39 }
 0x632   :  { %v820_v26 = vpop.f32.mrb[4].mxu1 }
 0x633   :  { %v821_v27 = vadd.f32 %v820_v26, %v747_v24  ;;  %v822_v28 = vpop.f32.mrb[5].mxu1  ;;  %v1140_v24 = vld [vmem:[#allocation20 + $0x50] sm:$0xff] }
 0x634   :  { %v823_v29 = vadd.f32 %v822_v28, %v751_v25  ;;  %v1141_v25 = vld [vmem:[#allocation20 + $0x58] sm:$0xff] }
 0x635   :  { %v825_v30 = vmul.f32 0.01, %v821_v27  ;;  %v2250_v26 = vpack.c.bf16 %v1141_v25, %v1140_v24  ;;  %v1444_v24 = vld [vmem:[#allocation5 + $0xa] ss:$0 sm:$0xff] }
 0x636   :  { %v826_v31 = vmul.f32 0.01, %v823_v29 }
 0x637   :  { %v827_v33 = vmax.f32 %v821_v27, %v825_v30  ;;  %v1442_v27 = vld [vmem:[#allocation5 + $0x8] ss:$0 sm:$0xff] }
 0x638   :  { %v828_v32 = vmax.f32 %v823_v29, %v826_v31 }
 0x63a   :  { %932 = vmatprep.mubr.f32.mxu0 %v828_v32 }
 0x63b   :  { %933 = vmatmul.mubr.f32.vlgmr.msra.gmra.mrb[6].mxu0 %v827_v33  ;;  %v1142_v33 = vld [vmem:[#allocation20 + $0x60] sm:$0xff] }
 0x63c   :  { %1894 = vmatprep.mubr.msk.f32.mxu0 %vm2695_vm0, %v2696_v1  ;;  %2212 = vmatpush3.bf16.msra.mxu0 %v2211_v43  ;;  %v2253_v35 = vpack.c.bf16 %v1143_v34, %v1142_v33  ;;  %v1228_v43 = vld [vmem:[#allocation22 + $0x18] sm:$0xff]  ;;  %v1334_v33 = vld [vmem:[#allocation23 + $0x70] sm:$0xff] }
 0x63d   :  { %2213 = vmatprep.subr.bf16.mxu0 %v2694_v0  ;;  %v2262_v44 = vpack.c.bf16 %v1228_v43, %v1227_v41  ;;  %v1335_v34 = vld [vmem:[#allocation23 + $0x78] sm:$0xff] }
 0x640   :  { %2215 = vmatpush3.bf16.msra.mxu0 %v2214_v45  ;;  %v1229_v45 = vld [vmem:[#allocation22 + $0x20] sm:$0xff] }
 0x641   :  { %2216 = vmatprep.subr.bf16.mxu0 %v2694_v0  ;;  %v2265_v47 = vpack.c.bf16 %v1230_v46, %v1229_v45 }
 0x644   :  { %2218 = vmatpush3.bf16.msra.mxu0 %v2217_v48  ;;  %v1231_v48 = vld [vmem:[#allocation22 + $0x30] sm:$0xff] }
 0x645   :  { %2219 = vmatprep.subr.bf16.mxu0 %v2694_v0  ;;  %v2268_v50 = vpack.c.bf16 %v1232_v49, %v1231_v48 }
 0x648   :  { %2221 = vmatpush3.bf16.msra.mxu0 %v2220_v51  ;;  %v1233_v51 = vld [vmem:[#allocation22 + $0x40] sm:$0xff] }
 0x649   :  { %2222 = vmatprep.subr.bf16.mxu0 %v2694_v0  ;;  %v2271_v53 = vpack.c.bf16 %v1234_v52, %v1233_v51 }
 0x64c   :  { %2224 = vmatpush3.bf16.msra.mxu0 %v2223_v54  ;;  %v1235_v54 = vld [vmem:[#allocation22 + $0x50] sm:$0xff] }
 0x64d   :  { %2225 = vmatprep.subr.bf16.mxu0 %v2694_v0  ;;  %v2274_v56 = vpack.c.bf16 %v1236_v55, %v1235_v54 }
 0x650   :  { %2227 = vmatpush3.bf16.msra.mxu0 %v2226_v57  ;;  %v1443_v57 = vld [vmem:[#allocation5 + $0x9] ss:$0 sm:$0xff] }
 0x651   :  { %2228 = vmatprep.subr.bf16.mxu0 %v2694_v0 }
 0x654   :  { %2230 = vmatpush3.bf16.msra.mxu0 %v2229_v5  ;;  %v1240_v5 = vld [vmem:[#allocation22 + $0x78] sm:$0xff] }
 0x655   :  { %2231 = vmatprep.subr.bf16.mxu0 %v2694_v0  ;;  %v2280_v6 = vpack.c.bf16 %v1240_v5, %v1239_v4 }
 0x658   :  { %2233 = vmatpush3.bf16.msra.mxu0 %v2232_v8  ;;  %v1321_v8 = vld [vmem:[#allocation23 + $0x8] sm:$0xff] }
 0x659   :  { %2258 = vmatprep.subr.bf16.mxu0 %v2694_v0  ;;  %v2283_v10 = vpack.c.bf16 %v1321_v8, %v1320_v7 }
 0x70e   :  { %v1564_v58 = vpop.f32.mrb[6].mxu0 }
 0x70f   :  { %v1565_v60 = vpop.f32.mrb[7].mxu0 }
 0x710   :  { %v1566_v61 = vadd.f32 %v1565_v60, %v1564_v58 }
 0x712   :  { %v935_v62 = vadd.f32 %v1566_v61, %v1441_v59 }
 0x714   :  { %v938_v63 = vmul.f32 0.01, %v935_v62 }
 0x716   :  { %v939_v2 = vmax.f32 %v935_v62, %v938_v63  ;;  %v1237_v63 = vld [vmem:[#allocation22 + $0x60] sm:$0xff] }
 0x718   :  { %1860 = vmatmul.mubr.f32.vlgmr.msra.gmra.mrb[6].mxu1 %v939_v2  ;;  %v1238_v2 = vld [vmem:[#allocation22 + $0x68] sm:$0xff] }
 0x719   :  { %1929 = vmatprep.mubr.msk.f32.mxu1 %vm2695_vm0, %v2696_v1  ;;  %2236 = vmatpush3.bf16.msra.mxu1 %v2235_v12  ;;  %v2277_v3 = vpack.c.bf16 %v1238_v2, %v1237_v63  ;;  %v2286_v12 = vpack.c.bf16 %v1323_v11, %v1322_v9 }
 0x71a   :  { %2237 = vmatprep.subr.bf16.mxu1 %v2694_v0 }
 0x71d   :  { %2239 = vmatpush3.bf16.msra.mxu1 %v2238_v14 }
 0x71e   :  { %2240 = vmatprep.subr.bf16.mxu1 %v2694_v0 }
 0x721   :  { %2242 = vmatpush3.bf16.msra.mxu1 %v2241_v17  ;;  %v2292_v17 = vpack.c.bf16 %v1327_v16, %v1326_v15 }
 0x722   :  { %2243 = vmatprep.subr.bf16.mxu1 %v2694_v0 }
 0x725   :  { %2245 = vmatpush3.bf16.msra.mxu1 %v2244_v20  ;;  %v2295_v20 = vpack.c.bf16 %v1329_v19, %v1328_v18 }
 0x726   :  { %2246 = vmatprep.subr.bf16.mxu1 %v2694_v0 }
 0x729   :  { %2248 = vmatpush3.bf16.msra.mxu1 %v2247_v23  ;;  %v2298_v23 = vpack.c.bf16 %v1331_v22, %v1330_v21 }
 0x72a   :  { %2249 = vmatprep.subr.bf16.mxu1 %v2694_v0 }
 0x72d   :  { %2251 = vmatpush3.bf16.msra.mxu1 %v2250_v26 }
 0x72e   :  { %2252 = vmatprep.subr.bf16.mxu1 %v2694_v0 }
 0x731   :  { %2254 = vmatpush3.bf16.msra.mxu1 %v2253_v35  ;;  %v2304_v35 = vpack.c.bf16 %v1335_v34, %v1334_v33 }
 0x732   :  { %2255 = vmatprep.subr.bf16.mxu1 %v2694_v0 }
 0x735   :  { %2257 = vmatpush3.bf16.msra.mxu1 %v2256_v38 }
 0x736   :  { %2282 = vmatprep.subr.bf16.mxu1 %v2694_v0 }
 0x7eb   :  { %v1029_v28 = vpop.f32.mrb[6].mxu1 }
 0x7ec   :  { %v1030_v29 = vadd.f32 %v1442_v27, %v1029_v28  ;;  %v1861_v30 = vpop.f32.mrb[7].mxu1 }
 0x7ed   :  { %v1332_v30 = vld [vmem:[#allocation23 + $0x60] sm:$0xff] }
 0x7ee   :  { %v1033_v31 = vmul.f32 0.01, %v1030_v29 }
 0x7f0   :  { %v1034_v32 = vmax.f32 %v1030_v29, %v1033_v31  ;;  %v1333_v31 = vld [vmem:[#allocation23 + $0x68] sm:$0xff] }
 0x7f2   :  { %1895 = vmatmul.mubr.f32.vlgmr.msra.gmra.mrb[8].mxu0 %v1034_v32  ;;  %v2301_v32 = vpack.c.bf16 %v1333_v31, %v1332_v30 }
 0x7f3   :  { %1964 = vmatprep.mubr.msk.f32.mxu0 %vm2695_vm0, %v2696_v1  ;;  %2260 = vmatpush3.bf16.msra.mxu0 %v2259_v42  ;;  %v1446_v42 = vld [vmem:[#allocation5 + $0xc] ss:$0 sm:$0xff] }
 0x7f4   :  { %2261 = vmatprep.subr.bf16.mxu0 %v2694_v0 }
 0x7f7   :  { %2263 = vmatpush3.bf16.msra.mxu0 %v2262_v44 }
 0x7f8   :  { %2264 = vmatprep.subr.bf16.mxu0 %v2694_v0 }
 0x7fb   :  { %2266 = vmatpush3.bf16.msra.mxu0 %v2265_v47 }
 0x7fc   :  { %2267 = vmatprep.subr.bf16.mxu0 %v2694_v0 }
 0x7ff   :  { %2269 = vmatpush3.bf16.msra.mxu0 %v2268_v50 }
 0x800   :  { %2270 = vmatprep.subr.bf16.mxu0 %v2694_v0 }
 0x803   :  { %2272 = vmatpush3.bf16.msra.mxu0 %v2271_v53 }
 0x804   :  { %2273 = vmatprep.subr.bf16.mxu0 %v2694_v0 }
 0x807   :  { %2275 = vmatpush3.bf16.msra.mxu0 %v2274_v56 }
 0x808   :  { %2276 = vmatprep.subr.bf16.mxu0 %v2694_v0 }
 0x80b   :  { %2278 = vmatpush3.bf16.msra.mxu0 %v2277_v3 }
 0x80c   :  { %2279 = vmatprep.subr.bf16.mxu0 %v2694_v0 }
 0x80f   :  { %2281 = vmatpush3.bf16.msra.mxu0 %v2280_v6 }
 0x8c5   :  { %v1124_v58 = vpop.f32.mrb[8].mxu0 }
 0x8c6   :  { %v1125_v59 = vadd.f32 %v1443_v57, %v1124_v58  ;;  %v1896_v60 = vpop.f32.mrb[9].mxu0 }
 0x8c8   :  { %v1128_v61 = vmul.f32 0.01, %v1125_v59 }
 0x8ca   :  { %v1129_v62 = vmax.f32 %v1125_v59, %v1128_v61 }
 0x8cc   :  { %1930 = vmatmul.mubr.f32.vlgmr.msra.gmra.mrb[8].mxu1 %v1129_v62 }
 0x8cd   :  { %1999 = vmatprep.mubr.msk.f32.mxu1 %vm2695_vm0, %v2696_v1  ;;  %2284 = vmatpush3.bf16.msra.mxu1 %v2283_v10  ;;  %v1324_v1 = vld [vmem:[#allocation23 + $0x20] sm:$0xff] }
 0x8ce   :  { %2285 = vmatprep.subr.bf16.mxu1 %v2694_v0  ;;  %v2289_v14 = vpack.c.bf16 %v1325_v13, %v1324_v1 }
 0x8d1   :  { %2287 = vmatpush3.bf16.msra.mxu1 %v2286_v12 }
 0x8d2   :  { %2288 = vmatprep.subr.bf16.mxu1 %v2694_v0 }
 0x8d5   :  { %2290 = vmatpush3.bf16.msra.mxu1 %v2289_v14 }
 0x8d6   :  { %2291 = vmatprep.subr.bf16.mxu1 %v2694_v0 }
 0x8d9   :  { %2293 = vmatpush3.bf16.msra.mxu1 %v2292_v17 }
 0x8da   :  { %2294 = vmatprep.subr.bf16.mxu1 %v2694_v0 }
 0x8dd   :  { %2296 = vmatpush3.bf16.msra.mxu1 %v2295_v20 }
 0x8de   :  { %2297 = vmatprep.subr.bf16.mxu1 %v2694_v0 }
 0x8e1   :  { %2299 = vmatpush3.bf16.msra.mxu1 %v2298_v23 }
 0x8e2   :  { %2300 = vmatprep.subr.bf16.mxu1 %v2694_v0 }
 0x8e5   :  { %2302 = vmatpush3.bf16.msra.mxu1 %v2301_v32 }
 0x8e6   :  { %2303 = vmatprep.subr.bf16.mxu1 %v2694_v0 }
 0x8e9   :  { %2305 = vmatpush3.bf16.msra.mxu1 %v2304_v35 }
 0x99f   :  { %v1219_v25 = vpop.f32.mrb[8].mxu1 }
 0x9a0   :  { %v1220_v26 = vadd.f32 %v1444_v24, %v1219_v25  ;;  %v1931_v27 = vpop.f32.mrb[9].mxu1 }
 0x9a2   :  { %v1223_v28 = vmul.f32 0.01, %v1220_v26 }
 0x9a4   :  { %v1224_v29 = vmax.f32 %v1220_v26, %v1223_v28 }
 0x9a6   :  { %1965 = vmatmul.mubr.f32.vlgmr.msra.gmra.mrb[10].mxu0 %v1224_v29 }
 0xa79   :  { %v1314_v37 = vpop.f32.mrb[10].mxu0 }
 0xa7a   :  { %v1315_v38 = vadd.f32 %v1445_v36, %v1314_v37  ;;  %v1966_v39 = vpop.f32.mrb[11].mxu0 }
 0xa7c   :  { %v1318_v40 = vmul.f32 0.01, %v1315_v38 }
 0xa7e   :  { %v1319_v41 = vmax.f32 %v1315_v38, %v1318_v40 }
 0xa80   :  { %2000 = vmatmul.mubr.f32.vlgmr.msra.gmra.mrb[10].mxu1 %v1319_v41 }
 0xb53   :  { %v1409_v43 = vpop.f32.mrb[10].mxu1 }
 0xb54   :  { %v1410_v44 = vadd.f32 %v1446_v42, %v1409_v43  ;;  %v2001_v45 = vpop.f32.mrb[11].mxu1 }
 0xb56   :  { %1413 = vst [vmem:[#allocation25] sm:$0xff] %v1410_v44 }
 0xb57   :  { %2647 = shalt.err (!%p2644_p4)
}
 0xb58   :  { %s2648_s4 = scalar_lea.hbm %s3136_s14, 128 }
 0xb59   :  { %p2649_p5 = scmp.ne.s32.totalorder %s3136_s14, %s2648_s4  ;;  %p2652_p6 = scmp.lt.u32.totalorder %s2648_s4, %s3136_s14 }
 0xb5b   :  { %p2654_p7 = pnand %p2652_p6, %p2649_p5 }
 0xb5d   :  { %2657 = shalt.err (!%p2654_p7)
}
 0xb5e   :  { %1423 = dma.vmem_to_hbm [thread:$0]  %s1421_s30, 128, %s3136_s14, [#allocation4]  }
 0xb5f   :  { %2674 = dma.done.wait [#allocation4], 128  }
 0xb60   :  { %2675 = vsyncadd [#allocation4], 4294967168 }
 0xb61   :  { %1427 = vsyncpa [#allocation3], 1 }
 0xb62   :  { %1428 = vsyncpa [#allocation6], 1 }
 0xb63   :  { %1429 = vsyncpa [#allocation9], 1 }
 0xb64   :  { %1430 = vsyncpa [#allocation12], 1 }
 0xb65   :  { %1431 = vsyncpa [#allocation15], 1 }
 0xb66   :  { %1432 = vsyncpa [#allocation18], 1 }
 0xb67   :  { %1433 = vsyncpa [#allocation21], 1 }
 0xb68   :  { %1434 = vsyncpa [#allocation24], 1 }
 0xb69   :  { %1435 = vsyncpa [#allocation4], 1 }

</bundles_post_ra>
